<compile_context>
chip_gen: v7x
topology: tpu7x:2x2x1
jax: 0.10.0
libtpu: 0.0.40
codegen_flags: <defaults>
</compile_context>

<pallas_src>
import functools

import jax
import jax.numpy as jnp
from jax import lax
from jax.experimental import pallas as pl
from jax.experimental.pallas import tpu as pltpu

# ---------------- synthetic "tiny BERT" config ----------------
HIDDEN = 32
N_LAYERS = 2
N_HEADS = 4
HEAD_DIM = HIDDEN // N_HEADS
INTERMEDIATE = 64
VOCAB = 100
MAX_POS = 16
N_CLASSES = 3
CLS_HIDDEN = 256          # nn.Linear(hidden_size, 256) in the PyTorch module
LN_EPS = 1e-12
ATTN_SCALE = 1.0 / (HEAD_DIM ** 0.5)


# ---------------- in-kernel helpers (trace-time, f32 elementwise math) ----------------
def _layernorm(x, g, b):
    mu = jnp.mean(x, axis=-1, keepdims=True)
    xc = x - mu
    var = jnp.mean(xc * xc, axis=-1, keepdims=True)
    return xc * lax.rsqrt(var + LN_EPS) * g + b


def _gelu(x):
    # tanh-approx GELU (BERT intermediate activation); EUP tanh, f32 math.
    return 0.5 * x * (1.0 + jnp.tanh(0.7978845608028654 * (x + 0.044715 * x * x * x)))


def _mm(x_f32, w_bf16, b_f32):
    # bf16 MXU operands, f32 accumulation, f32 bias add.
    y = jnp.dot(x_f32.astype(jnp.bfloat16), w_bf16, preferred_element_type=jnp.float32)
    return y + b_f32


# ---------------- the single fused kernel ----------------
def _bert_fused_kernel(emb_ref, bias_ref, emb_g_ref, emb_b_ref,
                       wqkv_ref, bqkv_ref, wo_ref, bo_ref, ln1g_ref, ln1b_ref,
                       wi_ref, bi_ref, wo2_ref, bo2_ref, ln2g_ref, ln2b_ref,
                       poolw_ref, poolb_ref, clshw_ref, clshb_ref,
                       clsow_ref, clsob_ref,
                       logits_ref, *, batch, seq):
    # --- embedding LayerNorm (no residual) ---
    h = _layernorm(emb_ref[...], emb_g_ref[...], emb_b_ref[...])      # (B*S, H) f32
    bias_all = bias_ref[...]                                          # (B, S) f32, precomputed

    # --- encoder layers (static unroll; weights stacked on a leading layer axis) ---
    for l in range(N_LAYERS):
        # fused QKV projection: one MXU pass -> (B*S, 3H)
        qkv = _mm(h, wqkv_ref[l], bqkv_ref[l])
        q = qkv[:, 0:HIDDEN]
        k = qkv[:, HIDDEN:2 * HIDDEN]
        v = qkv[:, 2 * HIDDEN:3 * HIDDEN]

        ctx_rows = []
        for b in range(batch):
            r0 = b * seq
            mask_bias = bias_all[b:b + 1, :]                          # (1, S)
            head_outs = []
            for hd in range(N_HEADS):
                c0 = hd * HEAD_DIM
                qb = q[r0:r0 + seq, c0:c0 + HEAD_DIM]                 # (S, dh) f32
                kb = k[r0:r0 + seq, c0:c0 + HEAD_DIM]
                vb = v[r0:r0 + seq, c0:c0 + HEAD_DIM]
                # contract last dims directly: no explicit transpose of K
                s = lax.dot_general(qb, kb, (((1,), (1,)), ((), ())),
                                    preferred_element_type=jnp.float32)
                s = s * ATTN_SCALE + mask_bias
                s = s - jnp.max(s, axis=-1, keepdims=True)
                p = jnp.exp(s)
                p = p * pl.reciprocal(jnp.sum(p, axis=-1, keepdims=True), approx=True)
                head_outs.append(jnp.dot(p, vb, preferred_element_type=jnp.float32))
            ctx_rows.append(jnp.concatenate(head_outs, axis=-1))      # (S, H)
        ctx = jnp.concatenate(ctx_rows, axis=0)                       # (B*S, H)

        attn_out = _mm(ctx, wo_ref[l], bo_ref[l])
        h = _layernorm(attn_out + h, ln1g_ref[l], ln1b_ref[l])

        ff = _gelu(_mm(h, wi_ref[l], bi_ref[l]))
        ff = _mm(ff, wo2_ref[l], bo2_ref[l])
        h = _layernorm(ff + h, ln2g_ref[l], ln2b_ref[l])

    # --- BERT pooler on the CLS token of each sequence: tanh(W * h[:,0] + b) ---
    cls_rows = jnp.concatenate([h[b * seq:b * seq + 1, :] for b in range(batch)],
                               axis=0)                                # (B, H)
    pooled = jnp.tanh(_mm(cls_rows, poolw_ref[...], poolb_ref[...]))

    # --- classifier head: drop -> hidden -> relu(drop(.)) -> out ---
    # TODO(synk): nn.Dropout is identity at inference (eval mode); no RNG masking applied.
    hid = jnp.maximum(_mm(pooled, clshw_ref[...], clshb_ref[...]), 0.0)
    logits = _mm(hid, clsow_ref[...], clsob_ref[...])
    logits_ref[...] = logits.astype(logits_ref.dtype)


# ---------------- deterministic parameter init ----------------
def init_params(key):
    keys = iter(jax.random.split(key, 64))

    def nrm(shape, dtype=jnp.float32):
        return (0.02 * jax.random.normal(next(keys), shape, jnp.float32)).astype(dtype)

    def zeros(shape):
        return jnp.zeros(shape, jnp.float32)

    def ones(shape):
        return jnp.ones(shape, jnp.float32)

    L = N_LAYERS
    bf = jnp.bfloat16
    return {
        # embeddings stay f32 (gather + LN in f32)
        "word_emb": nrm((VOCAB, HIDDEN)),
        "pos_emb": nrm((MAX_POS, HIDDEN)),
        "type_emb": nrm((2, HIDDEN)),
        "emb_ln_g": ones((1, HIDDEN)),
        "emb_ln_b": zeros((1, HIDDEN)),
        # per-layer weights stacked on a leading layer axis; matmul weights in bf16
        "wqkv": nrm((L, HIDDEN, 3 * HIDDEN), bf),
        "bqkv": zeros((L, 1, 3 * HIDDEN)),
        "wo": nrm((L, HIDDEN, HIDDEN), bf),
        "bo": zeros((L, 1, HIDDEN)),
        "ln1_g": ones((L, 1, HIDDEN)),
        "ln1_b": zeros((L, 1, HIDDEN)),
        "wi": nrm((L, HIDDEN, INTERMEDIATE), bf),
        "bi": zeros((L, 1, INTERMEDIATE)),
        "wo2": nrm((L, INTERMEDIATE, HIDDEN), bf),
        "bo2": zeros((L, 1, HIDDEN)),
        "ln2_g": ones((L, 1, HIDDEN)),
        "ln2_b": zeros((L, 1, HIDDEN)),
        # pooler + classifier head
        "pool_w": nrm((HIDDEN, HIDDEN), bf),
        "pool_b": zeros((1, HIDDEN)),
        "cls_hidden_w": nrm((HIDDEN, CLS_HIDDEN), bf),
        "cls_hidden_b": zeros((1, CLS_HIDDEN)),
        "cls_out_w": nrm((CLS_HIDDEN, N_CLASSES), bf),
        "cls_out_b": zeros((1, N_CLASSES)),
    }


# ---------------- forward pass (mirrors BERTTextClassifierBase.forward) ----------------
def bert_classifier_forward(params, input_ids, attention_mask):
    B, S = input_ids.shape

    # Embedding gather + sum is plain-JAX glue (gather has no clean small-scale Pallas
    # equivalent); single-segment token_type index 0 as in the reference usage.
    emb = (params["word_emb"][input_ids]
           + params["pos_emb"][:S][None, :, :]
           + params["type_emb"][0][None, None, :]).reshape(B * S, HIDDEN)

    # Additive attention-mask bias, computed once (shared by all layers/heads).
    bias = (1.0 - attention_mask.astype(jnp.float32)) * -10000.0        # (B, S)

    kernel = functools.partial(_bert_fused_kernel, batch=B, seq=S)
    return pl.pallas_call(
        kernel,
        out_shape=jax.ShapeDtypeStruct((B, N_CLASSES), jnp.float32),
        compiler_params=pltpu.CompilerParams(vmem_limit_bytes=32 * 1024 * 1024),
    )(emb, bias,
      params["emb_ln_g"], params["emb_ln_b"],
      params["wqkv"], params["bqkv"], params["wo"], params["bo"],
      params["ln1_g"], params["ln1_b"],
      params["wi"], params["bi"], params["wo2"], params["bo2"],
      params["ln2_g"], params["ln2_b"],
      params["pool_w"], params["pool_b"],
      params["cls_hidden_w"], params["cls_hidden_b"],
      params["cls_out_w"], params["cls_out_b"])


if __name__ == "__main__":
    key = jax.random.PRNGKey(0)
    pkey, ikey = jax.random.split(key)
    params = init_params(pkey)

    B, S = 2, 8
    input_ids = jax.random.randint(ikey, (B, S), 0, VOCAB, dtype=jnp.int32)
    attention_mask = jnp.ones((B, S), jnp.int32).at[1, 6:].set(0)   # pad last 2 tokens of sample 1

    fwd = jax.jit(bert_classifier_forward)
    logits = fwd(params, input_ids, attention_mask)
    jax.block_until_ready(logits)
    assert logits.shape == (B, N_CLASSES)
    print("KERNEL_OK")
</pallas_src>

<mosaic_0001>
module attributes {stable_mosaic.version = 11 : i64} {
  func.func @_bert_fused_kernel(%arg0: memref<16x32xf32, #tpu.memory_space<vmem>>, %arg1: memref<2x8xf32, #tpu.memory_space<vmem>>, %arg2: memref<1x32xf32, #tpu.memory_space<vmem>>, %arg3: memref<1x32xf32, #tpu.memory_space<vmem>>, %arg4: memref<2x32x96xbf16, #tpu.memory_space<vmem>>, %arg5: memref<2x1x96xf32, #tpu.memory_space<vmem>>, %arg6: memref<2x32x32xbf16, #tpu.memory_space<vmem>>, %arg7: memref<2x1x32xf32, #tpu.memory_space<vmem>>, %arg8: memref<2x1x32xf32, #tpu.memory_space<vmem>>, %arg9: memref<2x1x32xf32, #tpu.memory_space<vmem>>, %arg10: memref<2x32x64xbf16, #tpu.memory_space<vmem>>, %arg11: memref<2x1x64xf32, #tpu.memory_space<vmem>>, %arg12: memref<2x64x32xbf16, #tpu.memory_space<vmem>>, %arg13: memref<2x1x32xf32, #tpu.memory_space<vmem>>, %arg14: memref<2x1x32xf32, #tpu.memory_space<vmem>>, %arg15: memref<2x1x32xf32, #tpu.memory_space<vmem>>, %arg16: memref<32x32xbf16, #tpu.memory_space<vmem>>, %arg17: memref<1x32xf32, #tpu.memory_space<vmem>>, %arg18: memref<32x256xbf16, #tpu.memory_space<vmem>>, %arg19: memref<1x256xf32, #tpu.memory_space<vmem>>, %arg20: memref<256x3xbf16, #tpu.memory_space<vmem>>, %arg21: memref<1x3xf32, #tpu.memory_space<vmem>>, %arg22: memref<2x3xf32, #tpu.memory_space<vmem>>) attributes {dimension_semantics = [], scalar_prefetch = 0 : i64, scratch_operands = 0 : i64, tpu.core_type = #tpu.core_type<tc>} {
    %c0 = arith.constant 0 : index
    %c0_0 = arith.constant 0 : index
    %0 = vector.load %arg0[%c0, %c0_0] : memref<16x32xf32, #tpu.memory_space<vmem>>, vector<16x32xf32>
    %c0_1 = arith.constant 0 : index
    %c0_2 = arith.constant 0 : index
    %1 = vector.load %arg2[%c0_1, %c0_2] : memref<1x32xf32, #tpu.memory_space<vmem>>, vector<1x32xf32>
    %c0_3 = arith.constant 0 : index
    %c0_4 = arith.constant 0 : index
    %2 = vector.load %arg3[%c0_3, %c0_4] : memref<1x32xf32, #tpu.memory_space<vmem>>, vector<1x32xf32>
    %cst = arith.constant dense<0.000000e+00> : vector<16xf32>
    %3 = vector.multi_reduction <add>, %0, %cst [1] : vector<16x32xf32> to vector<16xf32>
    %4 = vector.shape_cast %3 : vector<16xf32> to vector<16x1xf32>
    %cst_5 = arith.constant 3.200000e+01 : f32
    %5 = vector.broadcast %cst_5 : f32 to vector<16x1xf32>
    %6 = arith.divf %4, %5 : vector<16x1xf32>
    %7 = vector.broadcast %6 : vector<16x1xf32> to vector<16x32xf32>
    %8 = arith.subf %0, %7 : vector<16x32xf32>
    %9 = arith.mulf %8, %8 : vector<16x32xf32>
    %cst_6 = arith.constant dense<0.000000e+00> : vector<16xf32>
    %10 = vector.multi_reduction <add>, %9, %cst_6 [1] : vector<16x32xf32> to vector<16xf32>
    %11 = vector.shape_cast %10 : vector<16xf32> to vector<16x1xf32>
    %cst_7 = arith.constant 3.200000e+01 : f32
    %12 = vector.broadcast %cst_7 : f32 to vector<16x1xf32>
    %13 = arith.divf %11, %12 : vector<16x1xf32>
    %cst_8 = arith.constant 9.99999996E-13 : f32
    %14 = vector.broadcast %cst_8 : f32 to vector<16x1xf32>
    %15 = arith.addf %13, %14 : vector<16x1xf32>
    %16 = math.rsqrt %15 : vector<16x1xf32>
    %17 = vector.broadcast %16 : vector<16x1xf32> to vector<16x32xf32>
    %18 = arith.mulf %8, %17 : vector<16x32xf32>
    %19 = vector.broadcast %1 : vector<1x32xf32> to vector<16x32xf32>
    %20 = arith.mulf %18, %19 : vector<16x32xf32>
    %21 = vector.broadcast %2 : vector<1x32xf32> to vector<16x32xf32>
    %22 = arith.addf %20, %21 : vector<16x32xf32>
    %c0_9 = arith.constant 0 : index
    %c0_10 = arith.constant 0 : index
    %23 = vector.load %arg1[%c0_9, %c0_10] : memref<2x8xf32, #tpu.memory_space<vmem>>, vector<2x8xf32>
    %c0_11 = arith.constant 0 : index
    %c0_12 = arith.constant 0 : index
    %c0_13 = arith.constant 0 : index
    %24 = vector.load %arg4[%c0_11, %c0_12, %c0_13] : memref<2x32x96xbf16, #tpu.memory_space<vmem>>, vector<1x32x96xbf16>
    %25 = vector.shape_cast %24 : vector<1x32x96xbf16> to vector<32x96xbf16>
    %c0_14 = arith.constant 0 : index
    %c0_15 = arith.constant 0 : index
    %c0_16 = arith.constant 0 : index
    %26 = vector.load %arg5[%c0_14, %c0_15, %c0_16] : memref<2x1x96xf32, #tpu.memory_space<vmem>>, vector<1x1x96xf32>
    %27 = vector.shape_cast %26 : vector<1x1x96xf32> to vector<1x96xf32>
    %28 = arith.truncf %22 : vector<16x32xf32> to vector<16x32xbf16>
    %cst_17 = arith.constant dense<0.000000e+00> : vector<16x96xf32>
    %29 = tpu.matmul %28, %25, %cst_17 {dimension_numbers = #tpu.dot_dimension_numbers<[1], [0], [0], [1], [0, 0, 1, 1], [], []>} : vector<16x32xbf16>, vector<32x96xbf16>, vector<16x96xf32> -> vector<16x96xf32>
    %30 = vector.broadcast %27 : vector<1x96xf32> to vector<16x96xf32>
    %31 = arith.addf %29, %30 : vector<16x96xf32>
    %32 = vector.extract_strided_slice %31 {offsets = [0, 0], sizes = [16, 32], strides = [1, 1]} : vector<16x96xf32> to vector<16x32xf32>
    %33 = vector.extract_strided_slice %31 {offsets = [0, 32], sizes = [16, 32], strides = [1, 1]} : vector<16x96xf32> to vector<16x32xf32>
    %34 = vector.extract_strided_slice %31 {offsets = [0, 64], sizes = [16, 32], strides = [1, 1]} : vector<16x96xf32> to vector<16x32xf32>
    %35 = vector.extract_strided_slice %23 {offsets = [0, 0], sizes = [1, 8], strides = [1, 1]} : vector<2x8xf32> to vector<1x8xf32>
    %36 = vector.extract_strided_slice %32 {offsets = [0, 0], sizes = [8, 8], strides = [1, 1]} : vector<16x32xf32> to vector<8x8xf32>
    %37 = vector.extract_strided_slice %33 {offsets = [0, 0], sizes = [8, 8], strides = [1, 1]} : vector<16x32xf32> to vector<8x8xf32>
    %38 = vector.extract_strided_slice %34 {offsets = [0, 0], sizes = [8, 8], strides = [1, 1]} : vector<16x32xf32> to vector<8x8xf32>
    %cst_18 = arith.constant dense<0.000000e+00> : vector<8x8xf32>
    %39 = tpu.matmul %36, %37, %cst_18 {dimension_numbers = #tpu.dot_dimension_numbers<[1], [1], [0], [0], [0, 0, 1, 0], [], []>} : vector<8x8xf32>, vector<8x8xf32>, vector<8x8xf32> -> vector<8x8xf32>
    %cst_19 = arith.constant 0.353553385 : f32
    %40 = vector.broadcast %cst_19 : f32 to vector<8x8xf32>
    %41 = arith.mulf %39, %40 : vector<8x8xf32>
    %42 = vector.broadcast %35 : vector<1x8xf32> to vector<8x8xf32>
    %43 = arith.addf %41, %42 : vector<8x8xf32>
    %cst_20 = arith.constant dense<0xFF800000> : vector<8xf32>
    %44 = vector.multi_reduction <maximumf>, %43, %cst_20 [1] : vector<8x8xf32> to vector<8xf32>
    %45 = vector.shape_cast %44 : vector<8xf32> to vector<8x1xf32>
    %46 = vector.broadcast %45 : vector<8x1xf32> to vector<8x8xf32>
    %47 = arith.subf %43, %46 : vector<8x8xf32>
    %48 = math.exp %47 : vector<8x8xf32>
    %cst_21 = arith.constant dense<0.000000e+00> : vector<8xf32>
    %49 = vector.multi_reduction <add>, %48, %cst_21 [1] : vector<8x8xf32> to vector<8xf32>
    %50 = vector.shape_cast %49 : vector<8xf32> to vector<8x1xf32>
    %51 = tpu.reciprocal %50 {approx = true} : vector<8x1xf32> -> vector<8x1xf32>
    %52 = vector.broadcast %51 : vector<8x1xf32> to vector<8x8xf32>
    %53 = arith.mulf %48, %52 : vector<8x8xf32>
    %cst_22 = arith.constant dense<0.000000e+00> : vector<8x8xf32>
    %54 = tpu.matmul %53, %38, %cst_22 {dimension_numbers = #tpu.dot_dimension_numbers<[1], [0], [0], [1], [0, 0, 1, 1], [], []>} : vector<8x8xf32>, vector<8x8xf32>, vector<8x8xf32> -> vector<8x8xf32>
    %55 = vector.extract_strided_slice %32 {offsets = [0, 8], sizes = [8, 8], strides = [1, 1]} : vector<16x32xf32> to vector<8x8xf32>
    %56 = vector.extract_strided_slice %33 {offsets = [0, 8], sizes = [8, 8], strides = [1, 1]} : vector<16x32xf32> to vector<8x8xf32>
    %57 = vector.extract_strided_slice %34 {offsets = [0, 8], sizes = [8, 8], strides = [1, 1]} : vector<16x32xf32> to vector<8x8xf32>
    %cst_23 = arith.constant dense<0.000000e+00> : vector<8x8xf32>
    %58 = tpu.matmul %55, %56, %cst_23 {dimension_numbers = #tpu.dot_dimension_numbers<[1], [1], [0], [0], [0, 0, 1, 0], [], []>} : vector<8x8xf32>, vector<8x8xf32>, vector<8x8xf32> -> vector<8x8xf32>
    %cst_24 = arith.constant 0.353553385 : f32
    %59 = vector.broadcast %cst_24 : f32 to vector<8x8xf32>
    %60 = arith.mulf %58, %59 : vector<8x8xf32>
    %61 = vector.broadcast %35 : vector<1x8xf32> to vector<8x8xf32>
    %62 = arith.addf %60, %61 : vector<8x8xf32>
    %cst_25 = arith.constant dense<0xFF800000> : vector<8xf32>
    %63 = vector.multi_reduction <maximumf>, %62, %cst_25 [1] : vector<8x8xf32> to vector<8xf32>
    %64 = vector.shape_cast %63 : vector<8xf32> to vector<8x1xf32>
    %65 = vector.broadcast %64 : vector<8x1xf32> to vector<8x8xf32>
    %66 = arith.subf %62, %65 : vector<8x8xf32>
    %67 = math.exp %66 : vector<8x8xf32>
    %cst_26 = arith.constant dense<0.000000e+00> : vector<8xf32>
    %68 = vector.multi_reduction <add>, %67, %cst_26 [1] : vector<8x8xf32> to vector<8xf32>
    %69 = vector.shape_cast %68 : vector<8xf32> to vector<8x1xf32>
    %70 = tpu.reciprocal %69 {approx = true} : vector<8x1xf32> -> vector<8x1xf32>
    %71 = vector.broadcast %70 : vector<8x1xf32> to vector<8x8xf32>
    %72 = arith.mulf %67, %71 : vector<8x8xf32>
    %cst_27 = arith.constant dense<0.000000e+00> : vector<8x8xf32>
    %73 = tpu.matmul %72, %57, %cst_27 {dimension_numbers = #tpu.dot_dimension_numbers<[1], [0], [0], [1], [0, 0, 1, 1], [], []>} : vector<8x8xf32>, vector<8x8xf32>, vector<8x8xf32> -> vector<8x8xf32>
    %74 = vector.extract_strided_slice %32 {offsets = [0, 16], sizes = [8, 8], strides = [1, 1]} : vector<16x32xf32> to vector<8x8xf32>
    %75 = vector.extract_strided_slice %33 {offsets = [0, 16], sizes = [8, 8], strides = [1, 1]} : vector<16x32xf32> to vector<8x8xf32>
    %76 = vector.extract_strided_slice %34 {offsets = [0, 16], sizes = [8, 8], strides = [1, 1]} : vector<16x32xf32> to vector<8x8xf32>
    %cst_28 = arith.constant dense<0.000000e+00> : vector<8x8xf32>
    %77 = tpu.matmul %74, %75, %cst_28 {dimension_numbers = #tpu.dot_dimension_numbers<[1], [1], [0], [0], [0, 0, 1, 0], [], []>} : vector<8x8xf32>, vector<8x8xf32>, vector<8x8xf32> -> vector<8x8xf32>
    %cst_29 = arith.constant 0.353553385 : f32
    %78 = vector.broadcast %cst_29 : f32 to vector<8x8xf32>
    %79 = arith.mulf %77, %78 : vector<8x8xf32>
    %80 = vector.broadcast %35 : vector<1x8xf32> to vector<8x8xf32>
    %81 = arith.addf %79, %80 : vector<8x8xf32>
    %cst_30 = arith.constant dense<0xFF800000> : vector<8xf32>
    %82 = vector.multi_reduction <maximumf>, %81, %cst_30 [1] : vector<8x8xf32> to vector<8xf32>
    %83 = vector.shape_cast %82 : vector<8xf32> to vector<8x1xf32>
    %84 = vector.broadcast %83 : vector<8x1xf32> to vector<8x8xf32>
    %85 = arith.subf %81, %84 : vector<8x8xf32>
    %86 = math.exp %85 : vector<8x8xf32>
    %cst_31 = arith.constant dense<0.000000e+00> : vector<8xf32>
    %87 = vector.multi_reduction <add>, %86, %cst_31 [1] : vector<8x8xf32> to vector<8xf32>
    %88 = vector.shape_cast %87 : vector<8xf32> to vector<8x1xf32>
    %89 = tpu.reciprocal %88 {approx = true} : vector<8x1xf32> -> vector<8x1xf32>
    %90 = vector.broadcast %89 : vector<8x1xf32> to vector<8x8xf32>
    %91 = arith.mulf %86, %90 : vector<8x8xf32>
    %cst_32 = arith.constant dense<0.000000e+00> : vector<8x8xf32>
    %92 = tpu.matmul %91, %76, %cst_32 {dimension_numbers = #tpu.dot_dimension_numbers<[1], [0], [0], [1], [0, 0, 1, 1], [], []>} : vector<8x8xf32>, vector<8x8xf32>, vector<8x8xf32> -> vector<8x8xf32>
    %93 = vector.extract_strided_slice %32 {offsets = [0, 24], sizes = [8, 8], strides = [1, 1]} : vector<16x32xf32> to vector<8x8xf32>
    %94 = vector.extract_strided_slice %33 {offsets = [0, 24], sizes = [8, 8], strides = [1, 1]} : vector<16x32xf32> to vector<8x8xf32>
    %95 = vector.extract_strided_slice %34 {offsets = [0, 24], sizes = [8, 8], strides = [1, 1]} : vector<16x32xf32> to vector<8x8xf32>
    %cst_33 = arith.constant dense<0.000000e+00> : vector<8x8xf32>
    %96 = tpu.matmul %93, %94, %cst_33 {dimension_numbers = #tpu.dot_dimension_numbers<[1], [1], [0], [0], [0, 0, 1, 0], [], []>} : vector<8x8xf32>, vector<8x8xf32>, vector<8x8xf32> -> vector<8x8xf32>
    %cst_34 = arith.constant 0.353553385 : f32
    %97 = vector.broadcast %cst_34 : f32 to vector<8x8xf32>
    %98 = arith.mulf %96, %97 : vector<8x8xf32>
    %99 = vector.broadcast %35 : vector<1x8xf32> to vector<8x8xf32>
    %100 = arith.addf %98, %99 : vector<8x8xf32>
    %cst_35 = arith.constant dense<0xFF800000> : vector<8xf32>
    %101 = vector.multi_reduction <maximumf>, %100, %cst_35 [1] : vector<8x8xf32> to vector<8xf32>
    %102 = vector.shape_cast %101 : vector<8xf32> to vector<8x1xf32>
    %103 = vector.broadcast %102 : vector<8x1xf32> to vector<8x8xf32>
    %104 = arith.subf %100, %103 : vector<8x8xf32>
    %105 = math.exp %104 : vector<8x8xf32>
    %cst_36 = arith.constant dense<0.000000e+00> : vector<8xf32>
    %106 = vector.multi_reduction <add>, %105, %cst_36 [1] : vector<8x8xf32> to vector<8xf32>
    %107 = vector.shape_cast %106 : vector<8xf32> to vector<8x1xf32>
    %108 = tpu.reciprocal %107 {approx = true} : vector<8x1xf32> -> vector<8x1xf32>
    %109 = vector.broadcast %108 : vector<8x1xf32> to vector<8x8xf32>
    %110 = arith.mulf %105, %109 : vector<8x8xf32>
    %cst_37 = arith.constant dense<0.000000e+00> : vector<8x8xf32>
    %111 = tpu.matmul %110, %95, %cst_37 {dimension_numbers = #tpu.dot_dimension_numbers<[1], [0], [0], [1], [0, 0, 1, 1], [], []>} : vector<8x8xf32>, vector<8x8xf32>, vector<8x8xf32> -> vector<8x8xf32>
    %112 = tpu.concatenate %54, %73, %92, %111 in 1 : vector<8x8xf32>, vector<8x8xf32>, vector<8x8xf32>, vector<8x8xf32> -> vector<8x32xf32>
    %113 = vector.extract_strided_slice %23 {offsets = [1, 0], sizes = [1, 8], strides = [1, 1]} : vector<2x8xf32> to vector<1x8xf32>
    %114 = vector.extract_strided_slice %32 {offsets = [8, 0], sizes = [8, 8], strides = [1, 1]} : vector<16x32xf32> to vector<8x8xf32>
    %115 = vector.extract_strided_slice %33 {offsets = [8, 0], sizes = [8, 8], strides = [1, 1]} : vector<16x32xf32> to vector<8x8xf32>
    %116 = vector.extract_strided_slice %34 {offsets = [8, 0], sizes = [8, 8], strides = [1, 1]} : vector<16x32xf32> to vector<8x8xf32>
    %cst_38 = arith.constant dense<0.000000e+00> : vector<8x8xf32>
    %117 = tpu.matmul %114, %115, %cst_38 {dimension_numbers = #tpu.dot_dimension_numbers<[1], [1], [0], [0], [0, 0, 1, 0], [], []>} : vector<8x8xf32>, vector<8x8xf32>, vector<8x8xf32> -> vector<8x8xf32>
    %cst_39 = arith.constant 0.353553385 : f32
    %118 = vector.broadcast %cst_39 : f32 to vector<8x8xf32>
    %119 = arith.mulf %117, %118 : vector<8x8xf32>
    %120 = vector.broadcast %113 : vector<1x8xf32> to vector<8x8xf32>
    %121 = arith.addf %119, %120 : vector<8x8xf32>
    %cst_40 = arith.constant dense<0xFF800000> : vector<8xf32>
    %122 = vector.multi_reduction <maximumf>, %121, %cst_40 [1] : vector<8x8xf32> to vector<8xf32>
    %123 = vector.shape_cast %122 : vector<8xf32> to vector<8x1xf32>
    %124 = vector.broadcast %123 : vector<8x1xf32> to vector<8x8xf32>
    %125 = arith.subf %121, %124 : vector<8x8xf32>
    %126 = math.exp %125 : vector<8x8xf32>
    %cst_41 = arith.constant dense<0.000000e+00> : vector<8xf32>
    %127 = vector.multi_reduction <add>, %126, %cst_41 [1] : vector<8x8xf32> to vector<8xf32>
    %128 = vector.shape_cast %127 : vector<8xf32> to vector<8x1xf32>
    %129 = tpu.reciprocal %128 {approx = true} : vector<8x1xf32> -> vector<8x1xf32>
    %130 = vector.broadcast %129 : vector<8x1xf32> to vector<8x8xf32>
    %131 = arith.mulf %126, %130 : vector<8x8xf32>
    %cst_42 = arith.constant dense<0.000000e+00> : vector<8x8xf32>
    %132 = tpu.matmul %131, %116, %cst_42 {dimension_numbers = #tpu.dot_dimension_numbers<[1], [0], [0], [1], [0, 0, 1, 1], [], []>} : vector<8x8xf32>, vector<8x8xf32>, vector<8x8xf32> -> vector<8x8xf32>
    %133 = vector.extract_strided_slice %32 {offsets = [8, 8], sizes = [8, 8], strides = [1, 1]} : vector<16x32xf32> to vector<8x8xf32>
    %134 = vector.extract_strided_slice %33 {offsets = [8, 8], sizes = [8, 8], strides = [1, 1]} : vector<16x32xf32> to vector<8x8xf32>
    %135 = vector.extract_strided_slice %34 {offsets = [8, 8], sizes = [8, 8], strides = [1, 1]} : vector<16x32xf32> to vector<8x8xf32>
    %cst_43 = arith.constant dense<0.000000e+00> : vector<8x8xf32>
    %136 = tpu.matmul %133, %134, %cst_43 {dimension_numbers = #tpu.dot_dimension_numbers<[1], [1], [0], [0], [0, 0, 1, 0], [], []>} : vector<8x8xf32>, vector<8x8xf32>, vector<8x8xf32> -> vector<8x8xf32>
    %cst_44 = arith.constant 0.353553385 : f32
    %137 = vector.broadcast %cst_44 : f32 to vector<8x8xf32>
    %138 = arith.mulf %136, %137 : vector<8x8xf32>
    %139 = vector.broadcast %113 : vector<1x8xf32> to vector<8x8xf32>
    %140 = arith.addf %138, %139 : vector<8x8xf32>
    %cst_45 = arith.constant dense<0xFF800000> : vector<8xf32>
    %141 = vector.multi_reduction <maximumf>, %140, %cst_45 [1] : vector<8x8xf32> to vector<8xf32>
    %142 = vector.shape_cast %141 : vector<8xf32> to vector<8x1xf32>
    %143 = vector.broadcast %142 : vector<8x1xf32> to vector<8x8xf32>
    %144 = arith.subf %140, %143 : vector<8x8xf32>
    %145 = math.exp %144 : vector<8x8xf32>
    %cst_46 = arith.constant dense<0.000000e+00> : vector<8xf32>
    %146 = vector.multi_reduction <add>, %145, %cst_46 [1] : vector<8x8xf32> to vector<8xf32>
    %147 = vector.shape_cast %146 : vector<8xf32> to vector<8x1xf32>
    %148 = tpu.reciprocal %147 {approx = true} : vector<8x1xf32> -> vector<8x1xf32>
    %149 = vector.broadcast %148 : vector<8x1xf32> to vector<8x8xf32>
    %150 = arith.mulf %145, %149 : vector<8x8xf32>
    %cst_47 = arith.constant dense<0.000000e+00> : vector<8x8xf32>
    %151 = tpu.matmul %150, %135, %cst_47 {dimension_numbers = #tpu.dot_dimension_numbers<[1], [0], [0], [1], [0, 0, 1, 1], [], []>} : vector<8x8xf32>, vector<8x8xf32>, vector<8x8xf32> -> vector<8x8xf32>
    %152 = vector.extract_strided_slice %32 {offsets = [8, 16], sizes = [8, 8], strides = [1, 1]} : vector<16x32xf32> to vector<8x8xf32>
    %153 = vector.extract_strided_slice %33 {offsets = [8, 16], sizes = [8, 8], strides = [1, 1]} : vector<16x32xf32> to vector<8x8xf32>
    %154 = vector.extract_strided_slice %34 {offsets = [8, 16], sizes = [8, 8], strides = [1, 1]} : vector<16x32xf32> to vector<8x8xf32>
    %cst_48 = arith.constant dense<0.000000e+00> : vector<8x8xf32>
    %155 = tpu.matmul %152, %153, %cst_48 {dimension_numbers = #tpu.dot_dimension_numbers<[1], [1], [0], [0], [0, 0, 1, 0], [], []>} : vector<8x8xf32>, vector<8x8xf32>, vector<8x8xf32> -> vector<8x8xf32>
    %cst_49 = arith.constant 0.353553385 : f32
    %156 = vector.broadcast %cst_49 : f32 to vector<8x8xf32>
    %157 = arith.mulf %155, %156 : vector<8x8xf32>
    %158 = vector.broadcast %113 : vector<1x8xf32> to vector<8x8xf32>
    %159 = arith.addf %157, %158 : vector<8x8xf32>
    %cst_50 = arith.constant dense<0xFF800000> : vector<8xf32>
    %160 = vector.multi_reduction <maximumf>, %159, %cst_50 [1] : vector<8x8xf32> to vector<8xf32>
    %161 = vector.shape_cast %160 : vector<8xf32> to vector<8x1xf32>
    %162 = vector.broadcast %161 : vector<8x1xf32> to vector<8x8xf32>
    %163 = arith.subf %159, %162 : vector<8x8xf32>
    %164 = math.exp %163 : vector<8x8xf32>
    %cst_51 = arith.constant dense<0.000000e+00> : vector<8xf32>
    %165 = vector.multi_reduction <add>, %164, %cst_51 [1] : vector<8x8xf32> to vector<8xf32>
    %166 = vector.shape_cast %165 : vector<8xf32> to vector<8x1xf32>
    %167 = tpu.reciprocal %166 {approx = true} : vector<8x1xf32> -> vector<8x1xf32>
    %168 = vector.broadcast %167 : vector<8x1xf32> to vector<8x8xf32>
    %169 = arith.mulf %164, %168 : vector<8x8xf32>
    %cst_52 = arith.constant dense<0.000000e+00> : vector<8x8xf32>
    %170 = tpu.matmul %169, %154, %cst_52 {dimension_numbers = #tpu.dot_dimension_numbers<[1], [0], [0], [1], [0, 0, 1, 1], [], []>} : vector<8x8xf32>, vector<8x8xf32>, vector<8x8xf32> -> vector<8x8xf32>
    %171 = vector.extract_strided_slice %32 {offsets = [8, 24], sizes = [8, 8], strides = [1, 1]} : vector<16x32xf32> to vector<8x8xf32>
    %172 = vector.extract_strided_slice %33 {offsets = [8, 24], sizes = [8, 8], strides = [1, 1]} : vector<16x32xf32> to vector<8x8xf32>
    %173 = vector.extract_strided_slice %34 {offsets = [8, 24], sizes = [8, 8], strides = [1, 1]} : vector<16x32xf32> to vector<8x8xf32>
    %cst_53 = arith.constant dense<0.000000e+00> : vector<8x8xf32>
    %174 = tpu.matmul %171, %172, %cst_53 {dimension_numbers = #tpu.dot_dimension_numbers<[1], [1], [0], [0], [0, 0, 1, 0], [], []>} : vector<8x8xf32>, vector<8x8xf32>, vector<8x8xf32> -> vector<8x8xf32>
    %cst_54 = arith.constant 0.353553385 : f32
    %175 = vector.broadcast %cst_54 : f32 to vector<8x8xf32>
    %176 = arith.mulf %174, %175 : vector<8x8xf32>
    %177 = vector.broadcast %113 : vector<1x8xf32> to vector<8x8xf32>
    %178 = arith.addf %176, %177 : vector<8x8xf32>
    %cst_55 = arith.constant dense<0xFF800000> : vector<8xf32>
    %179 = vector.multi_reduction <maximumf>, %178, %cst_55 [1] : vector<8x8xf32> to vector<8xf32>
    %180 = vector.shape_cast %179 : vector<8xf32> to vector<8x1xf32>
    %181 = vector.broadcast %180 : vector<8x1xf32> to vector<8x8xf32>
    %182 = arith.subf %178, %181 : vector<8x8xf32>
    %183 = math.exp %182 : vector<8x8xf32>
    %cst_56 = arith.constant dense<0.000000e+00> : vector<8xf32>
    %184 = vector.multi_reduction <add>, %183, %cst_56 [1] : vector<8x8xf32> to vector<8xf32>
    %185 = vector.shape_cast %184 : vector<8xf32> to vector<8x1xf32>
    %186 = tpu.reciprocal %185 {approx = true} : vector<8x1xf32> -> vector<8x1xf32>
    %187 = vector.broadcast %186 : vector<8x1xf32> to vector<8x8xf32>
    %188 = arith.mulf %183, %187 : vector<8x8xf32>
    %cst_57 = arith.constant dense<0.000000e+00> : vector<8x8xf32>
    %189 = tpu.matmul %188, %173, %cst_57 {dimension_numbers = #tpu.dot_dimension_numbers<[1], [0], [0], [1], [0, 0, 1, 1], [], []>} : vector<8x8xf32>, vector<8x8xf32>, vector<8x8xf32> -> vector<8x8xf32>
    %190 = tpu.concatenate %132, %151, %170, %189 in 1 : vector<8x8xf32>, vector<8x8xf32>, vector<8x8xf32>, vector<8x8xf32> -> vector<8x32xf32>
    %191 = tpu.concatenate %112, %190 in 0 : vector<8x32xf32>, vector<8x32xf32> -> vector<16x32xf32>
    %c0_58 = arith.constant 0 : index
    %c0_59 = arith.constant 0 : index
    %c0_60 = arith.constant 0 : index
    %192 = vector.load %arg6[%c0_58, %c0_59, %c0_60] : memref<2x32x32xbf16, #tpu.memory_space<vmem>>, vector<1x32x32xbf16>
    %193 = vector.shape_cast %192 : vector<1x32x32xbf16> to vector<32x32xbf16>
    %c0_61 = arith.constant 0 : index
    %c0_62 = arith.constant 0 : index
    %c0_63 = arith.constant 0 : index
    %194 = vector.load %arg7[%c0_61, %c0_62, %c0_63] : memref<2x1x32xf32, #tpu.memory_space<vmem>>, vector<1x1x32xf32>
    %195 = vector.shape_cast %194 : vector<1x1x32xf32> to vector<1x32xf32>
    %196 = arith.truncf %191 : vector<16x32xf32> to vector<16x32xbf16>
    %cst_64 = arith.constant dense<0.000000e+00> : vector<16x32xf32>
    %197 = tpu.matmul %196, %193, %cst_64 {dimension_numbers = #tpu.dot_dimension_numbers<[1], [0], [0], [1], [0, 0, 1, 1], [], []>} : vector<16x32xbf16>, vector<32x32xbf16>, vector<16x32xf32> -> vector<16x32xf32>
    %198 = vector.broadcast %195 : vector<1x32xf32> to vector<16x32xf32>
    %199 = arith.addf %197, %198 : vector<16x32xf32>
    %200 = arith.addf %199, %22 : vector<16x32xf32>
    %c0_65 = arith.constant 0 : index
    %c0_66 = arith.constant 0 : index
    %c0_67 = arith.constant 0 : index
    %201 = vector.load %arg8[%c0_65, %c0_66, %c0_67] : memref<2x1x32xf32, #tpu.memory_space<vmem>>, vector<1x1x32xf32>
    %202 = vector.shape_cast %201 : vector<1x1x32xf32> to vector<1x32xf32>
    %c0_68 = arith.constant 0 : index
    %c0_69 = arith.constant 0 : index
    %c0_70 = arith.constant 0 : index
    %203 = vector.load %arg9[%c0_68, %c0_69, %c0_70] : memref<2x1x32xf32, #tpu.memory_space<vmem>>, vector<1x1x32xf32>
    %204 = vector.shape_cast %203 : vector<1x1x32xf32> to vector<1x32xf32>
    %cst_71 = arith.constant dense<0.000000e+00> : vector<16xf32>
    %205 = vector.multi_reduction <add>, %200, %cst_71 [1] : vector<16x32xf32> to vector<16xf32>
    %206 = vector.shape_cast %205 : vector<16xf32> to vector<16x1xf32>
    %cst_72 = arith.constant 3.200000e+01 : f32
    %207 = vector.broadcast %cst_72 : f32 to vector<16x1xf32>
    %208 = arith.divf %206, %207 : vector<16x1xf32>
    %209 = vector.broadcast %208 : vector<16x1xf32> to vector<16x32xf32>
    %210 = arith.subf %200, %209 : vector<16x32xf32>
    %211 = arith.mulf %210, %210 : vector<16x32xf32>
    %cst_73 = arith.constant dense<0.000000e+00> : vector<16xf32>
    %212 = vector.multi_reduction <add>, %211, %cst_73 [1] : vector<16x32xf32> to vector<16xf32>
    %213 = vector.shape_cast %212 : vector<16xf32> to vector<16x1xf32>
    %cst_74 = arith.constant 3.200000e+01 : f32
    %214 = vector.broadcast %cst_74 : f32 to vector<16x1xf32>
    %215 = arith.divf %213, %214 : vector<16x1xf32>
    %cst_75 = arith.constant 9.99999996E-13 : f32
    %216 = vector.broadcast %cst_75 : f32 to vector<16x1xf32>
    %217 = arith.addf %215, %216 : vector<16x1xf32>
    %218 = math.rsqrt %217 : vector<16x1xf32>
    %219 = vector.broadcast %218 : vector<16x1xf32> to vector<16x32xf32>
    %220 = arith.mulf %210, %219 : vector<16x32xf32>
    %221 = vector.broadcast %202 : vector<1x32xf32> to vector<16x32xf32>
    %222 = arith.mulf %220, %221 : vector<16x32xf32>
    %223 = vector.broadcast %204 : vector<1x32xf32> to vector<16x32xf32>
    %224 = arith.addf %222, %223 : vector<16x32xf32>
    %c0_76 = arith.constant 0 : index
    %c0_77 = arith.constant 0 : index
    %c0_78 = arith.constant 0 : index
    %225 = vector.load %arg10[%c0_76, %c0_77, %c0_78] : memref<2x32x64xbf16, #tpu.memory_space<vmem>>, vector<1x32x64xbf16>
    %226 = vector.shape_cast %225 : vector<1x32x64xbf16> to vector<32x64xbf16>
    %c0_79 = arith.constant 0 : index
    %c0_80 = arith.constant 0 : index
    %c0_81 = arith.constant 0 : index
    %227 = vector.load %arg11[%c0_79, %c0_80, %c0_81] : memref<2x1x64xf32, #tpu.memory_space<vmem>>, vector<1x1x64xf32>
    %228 = vector.shape_cast %227 : vector<1x1x64xf32> to vector<1x64xf32>
    %229 = arith.truncf %224 : vector<16x32xf32> to vector<16x32xbf16>
    %cst_82 = arith.constant dense<0.000000e+00> : vector<16x64xf32>
    %230 = tpu.matmul %229, %226, %cst_82 {dimension_numbers = #tpu.dot_dimension_numbers<[1], [0], [0], [1], [0, 0, 1, 1], [], []>} : vector<16x32xbf16>, vector<32x64xbf16>, vector<16x64xf32> -> vector<16x64xf32>
    %231 = vector.broadcast %228 : vector<1x64xf32> to vector<16x64xf32>
    %232 = arith.addf %230, %231 : vector<16x64xf32>
    %cst_83 = arith.constant 5.000000e-01 : f32
    %233 = vector.broadcast %cst_83 : f32 to vector<16x64xf32>
    %234 = arith.mulf %233, %232 : vector<16x64xf32>
    %cst_84 = arith.constant 4.471500e-02 : f32
    %235 = vector.broadcast %cst_84 : f32 to vector<16x64xf32>
    %236 = arith.mulf %235, %232 : vector<16x64xf32>
    %237 = arith.mulf %236, %232 : vector<16x64xf32>
    %238 = arith.mulf %237, %232 : vector<16x64xf32>
    %239 = arith.addf %232, %238 : vector<16x64xf32>
    %cst_85 = arith.constant 0.797884583 : f32
    %240 = vector.broadcast %cst_85 : f32 to vector<16x64xf32>
    %241 = arith.mulf %240, %239 : vector<16x64xf32>
    %242 = math.tanh %241 : vector<16x64xf32>
    %cst_86 = arith.constant 1.000000e+00 : f32
    %243 = vector.broadcast %cst_86 : f32 to vector<16x64xf32>
    %244 = arith.addf %243, %242 : vector<16x64xf32>
    %245 = arith.mulf %234, %244 : vector<16x64xf32>
    %c0_87 = arith.constant 0 : index
    %c0_88 = arith.constant 0 : index
    %c0_89 = arith.constant 0 : index
    %246 = vector.load %arg12[%c0_87, %c0_88, %c0_89] : memref<2x64x32xbf16, #tpu.memory_space<vmem>>, vector<1x64x32xbf16>
    %247 = vector.shape_cast %246 : vector<1x64x32xbf16> to vector<64x32xbf16>
    %c0_90 = arith.constant 0 : index
    %c0_91 = arith.constant 0 : index
    %c0_92 = arith.constant 0 : index
    %248 = vector.load %arg13[%c0_90, %c0_91, %c0_92] : memref<2x1x32xf32, #tpu.memory_space<vmem>>, vector<1x1x32xf32>
    %249 = vector.shape_cast %248 : vector<1x1x32xf32> to vector<1x32xf32>
    %250 = arith.truncf %245 : vector<16x64xf32> to vector<16x64xbf16>
    %cst_93 = arith.constant dense<0.000000e+00> : vector<16x32xf32>
    %251 = tpu.matmul %250, %247, %cst_93 {dimension_numbers = #tpu.dot_dimension_numbers<[1], [0], [0], [1], [0, 0, 1, 1], [], []>} : vector<16x64xbf16>, vector<64x32xbf16>, vector<16x32xf32> -> vector<16x32xf32>
    %252 = vector.broadcast %249 : vector<1x32xf32> to vector<16x32xf32>
    %253 = arith.addf %251, %252 : vector<16x32xf32>
    %254 = arith.addf %253, %224 : vector<16x32xf32>
    %c0_94 = arith.constant 0 : index
    %c0_95 = arith.constant 0 : index
    %c0_96 = arith.constant 0 : index
    %255 = vector.load %arg14[%c0_94, %c0_95, %c0_96] : memref<2x1x32xf32, #tpu.memory_space<vmem>>, vector<1x1x32xf32>
    %256 = vector.shape_cast %255 : vector<1x1x32xf32> to vector<1x32xf32>
    %c0_97 = arith.constant 0 : index
    %c0_98 = arith.constant 0 : index
    %c0_99 = arith.constant 0 : index
    %257 = vector.load %arg15[%c0_97, %c0_98, %c0_99] : memref<2x1x32xf32, #tpu.memory_space<vmem>>, vector<1x1x32xf32>
    %258 = vector.shape_cast %257 : vector<1x1x32xf32> to vector<1x32xf32>
    %cst_100 = arith.constant dense<0.000000e+00> : vector<16xf32>
    %259 = vector.multi_reduction <add>, %254, %cst_100 [1] : vector<16x32xf32> to vector<16xf32>
    %260 = vector.shape_cast %259 : vector<16xf32> to vector<16x1xf32>
    %cst_101 = arith.constant 3.200000e+01 : f32
    %261 = vector.broadcast %cst_101 : f32 to vector<16x1xf32>
    %262 = arith.divf %260, %261 : vector<16x1xf32>
    %263 = vector.broadcast %262 : vector<16x1xf32> to vector<16x32xf32>
    %264 = arith.subf %254, %263 : vector<16x32xf32>
    %265 = arith.mulf %264, %264 : vector<16x32xf32>
    %cst_102 = arith.constant dense<0.000000e+00> : vector<16xf32>
    %266 = vector.multi_reduction <add>, %265, %cst_102 [1] : vector<16x32xf32> to vector<16xf32>
    %267 = vector.shape_cast %266 : vector<16xf32> to vector<16x1xf32>
    %cst_103 = arith.constant 3.200000e+01 : f32
    %268 = vector.broadcast %cst_103 : f32 to vector<16x1xf32>
    %269 = arith.divf %267, %268 : vector<16x1xf32>
    %cst_104 = arith.constant 9.99999996E-13 : f32
    %270 = vector.broadcast %cst_104 : f32 to vector<16x1xf32>
    %271 = arith.addf %269, %270 : vector<16x1xf32>
    %272 = math.rsqrt %271 : vector<16x1xf32>
    %273 = vector.broadcast %272 : vector<16x1xf32> to vector<16x32xf32>
    %274 = arith.mulf %264, %273 : vector<16x32xf32>
    %275 = vector.broadcast %256 : vector<1x32xf32> to vector<16x32xf32>
    %276 = arith.mulf %274, %275 : vector<16x32xf32>
    %277 = vector.broadcast %258 : vector<1x32xf32> to vector<16x32xf32>
    %278 = arith.addf %276, %277 : vector<16x32xf32>
    %c1 = arith.constant 1 : index
    %c0_105 = arith.constant 0 : index
    %c0_106 = arith.constant 0 : index
    %279 = vector.load %arg4[%c1, %c0_105, %c0_106] : memref<2x32x96xbf16, #tpu.memory_space<vmem>>, vector<1x32x96xbf16>
    %280 = vector.shape_cast %279 : vector<1x32x96xbf16> to vector<32x96xbf16>
    %c1_107 = arith.constant 1 : index
    %c0_108 = arith.constant 0 : index
    %c0_109 = arith.constant 0 : index
    %281 = vector.load %arg5[%c1_107, %c0_108, %c0_109] : memref<2x1x96xf32, #tpu.memory_space<vmem>>, vector<1x1x96xf32>
    %282 = vector.shape_cast %281 : vector<1x1x96xf32> to vector<1x96xf32>
    %283 = arith.truncf %278 : vector<16x32xf32> to vector<16x32xbf16>
    %cst_110 = arith.constant dense<0.000000e+00> : vector<16x96xf32>
    %284 = tpu.matmul %283, %280, %cst_110 {dimension_numbers = #tpu.dot_dimension_numbers<[1], [0], [0], [1], [0, 0, 1, 1], [], []>} : vector<16x32xbf16>, vector<32x96xbf16>, vector<16x96xf32> -> vector<16x96xf32>
    %285 = vector.broadcast %282 : vector<1x96xf32> to vector<16x96xf32>
    %286 = arith.addf %284, %285 : vector<16x96xf32>
    %287 = vector.extract_strided_slice %286 {offsets = [0, 0], sizes = [16, 32], strides = [1, 1]} : vector<16x96xf32> to vector<16x32xf32>
    %288 = vector.extract_strided_slice %286 {offsets = [0, 32], sizes = [16, 32], strides = [1, 1]} : vector<16x96xf32> to vector<16x32xf32>
    %289 = vector.extract_strided_slice %286 {offsets = [0, 64], sizes = [16, 32], strides = [1, 1]} : vector<16x96xf32> to vector<16x32xf32>
    %290 = vector.extract_strided_slice %23 {offsets = [0, 0], sizes = [1, 8], strides = [1, 1]} : vector<2x8xf32> to vector<1x8xf32>
    %291 = vector.extract_strided_slice %287 {offsets = [0, 0], sizes = [8, 8], strides = [1, 1]} : vector<16x32xf32> to vector<8x8xf32>
    %292 = vector.extract_strided_slice %288 {offsets = [0, 0], sizes = [8, 8], strides = [1, 1]} : vector<16x32xf32> to vector<8x8xf32>
    %293 = vector.extract_strided_slice %289 {offsets = [0, 0], sizes = [8, 8], strides = [1, 1]} : vector<16x32xf32> to vector<8x8xf32>
    %cst_111 = arith.constant dense<0.000000e+00> : vector<8x8xf32>
    %294 = tpu.matmul %291, %292, %cst_111 {dimension_numbers = #tpu.dot_dimension_numbers<[1], [1], [0], [0], [0, 0, 1, 0], [], []>} : vector<8x8xf32>, vector<8x8xf32>, vector<8x8xf32> -> vector<8x8xf32>
    %cst_112 = arith.constant 0.353553385 : f32
    %295 = vector.broadcast %cst_112 : f32 to vector<8x8xf32>
    %296 = arith.mulf %294, %295 : vector<8x8xf32>
    %297 = vector.broadcast %290 : vector<1x8xf32> to vector<8x8xf32>
    %298 = arith.addf %296, %297 : vector<8x8xf32>
    %cst_113 = arith.constant dense<0xFF800000> : vector<8xf32>
    %299 = vector.multi_reduction <maximumf>, %298, %cst_113 [1] : vector<8x8xf32> to vector<8xf32>
    %300 = vector.shape_cast %299 : vector<8xf32> to vector<8x1xf32>
    %301 = vector.broadcast %300 : vector<8x1xf32> to vector<8x8xf32>
    %302 = arith.subf %298, %301 : vector<8x8xf32>
    %303 = math.exp %302 : vector<8x8xf32>
    %cst_114 = arith.constant dense<0.000000e+00> : vector<8xf32>
    %304 = vector.multi_reduction <add>, %303, %cst_114 [1] : vector<8x8xf32> to vector<8xf32>
    %305 = vector.shape_cast %304 : vector<8xf32> to vector<8x1xf32>
    %306 = tpu.reciprocal %305 {approx = true} : vector<8x1xf32> -> vector<8x1xf32>
    %307 = vector.broadcast %306 : vector<8x1xf32> to vector<8x8xf32>
    %308 = arith.mulf %303, %307 : vector<8x8xf32>
    %cst_115 = arith.constant dense<0.000000e+00> : vector<8x8xf32>
    %309 = tpu.matmul %308, %293, %cst_115 {dimension_numbers = #tpu.dot_dimension_numbers<[1], [0], [0], [1], [0, 0, 1, 1], [], []>} : vector<8x8xf32>, vector<8x8xf32>, vector<8x8xf32> -> vector<8x8xf32>
    %310 = vector.extract_strided_slice %287 {offsets = [0, 8], sizes = [8, 8], strides = [1, 1]} : vector<16x32xf32> to vector<8x8xf32>
    %311 = vector.extract_strided_slice %288 {offsets = [0, 8], sizes = [8, 8], strides = [1, 1]} : vector<16x32xf32> to vector<8x8xf32>
    %312 = vector.extract_strided_slice %289 {offsets = [0, 8], sizes = [8, 8], strides = [1, 1]} : vector<16x32xf32> to vector<8x8xf32>
    %cst_116 = arith.constant dense<0.000000e+00> : vector<8x8xf32>
    %313 = tpu.matmul %310, %311, %cst_116 {dimension_numbers = #tpu.dot_dimension_numbers<[1], [1], [0], [0], [0, 0, 1, 0], [], []>} : vector<8x8xf32>, vector<8x8xf32>, vector<8x8xf32> -> vector<8x8xf32>
    %cst_117 = arith.constant 0.353553385 : f32
    %314 = vector.broadcast %cst_117 : f32 to vector<8x8xf32>
    %315 = arith.mulf %313, %314 : vector<8x8xf32>
    %316 = vector.broadcast %290 : vector<1x8xf32> to vector<8x8xf32>
    %317 = arith.addf %315, %316 : vector<8x8xf32>
    %cst_118 = arith.constant dense<0xFF800000> : vector<8xf32>
    %318 = vector.multi_reduction <maximumf>, %317, %cst_118 [1] : vector<8x8xf32> to vector<8xf32>
    %319 = vector.shape_cast %318 : vector<8xf32> to vector<8x1xf32>
    %320 = vector.broadcast %319 : vector<8x1xf32> to vector<8x8xf32>
    %321 = arith.subf %317, %320 : vector<8x8xf32>
    %322 = math.exp %321 : vector<8x8xf32>
    %cst_119 = arith.constant dense<0.000000e+00> : vector<8xf32>
    %323 = vector.multi_reduction <add>, %322, %cst_119 [1] : vector<8x8xf32> to vector<8xf32>
    %324 = vector.shape_cast %323 : vector<8xf32> to vector<8x1xf32>
    %325 = tpu.reciprocal %324 {approx = true} : vector<8x1xf32> -> vector<8x1xf32>
    %326 = vector.broadcast %325 : vector<8x1xf32> to vector<8x8xf32>
    %327 = arith.mulf %322, %326 : vector<8x8xf32>
    %cst_120 = arith.constant dense<0.000000e+00> : vector<8x8xf32>
    %328 = tpu.matmul %327, %312, %cst_120 {dimension_numbers = #tpu.dot_dimension_numbers<[1], [0], [0], [1], [0, 0, 1, 1], [], []>} : vector<8x8xf32>, vector<8x8xf32>, vector<8x8xf32> -> vector<8x8xf32>
    %329 = vector.extract_strided_slice %287 {offsets = [0, 16], sizes = [8, 8], strides = [1, 1]} : vector<16x32xf32> to vector<8x8xf32>
    %330 = vector.extract_strided_slice %288 {offsets = [0, 16], sizes = [8, 8], strides = [1, 1]} : vector<16x32xf32> to vector<8x8xf32>
    %331 = vector.extract_strided_slice %289 {offsets = [0, 16], sizes = [8, 8], strides = [1, 1]} : vector<16x32xf32> to vector<8x8xf32>
    %cst_121 = arith.constant dense<0.000000e+00> : vector<8x8xf32>
    %332 = tpu.matmul %329, %330, %cst_121 {dimension_numbers = #tpu.dot_dimension_numbers<[1], [1], [0], [0], [0, 0, 1, 0], [], []>} : vector<8x8xf32>, vector<8x8xf32>, vector<8x8xf32> -> vector<8x8xf32>
    %cst_122 = arith.constant 0.353553385 : f32
    %333 = vector.broadcast %cst_122 : f32 to vector<8x8xf32>
    %334 = arith.mulf %332, %333 : vector<8x8xf32>
    %335 = vector.broadcast %290 : vector<1x8xf32> to vector<8x8xf32>
    %336 = arith.addf %334, %335 : vector<8x8xf32>
    %cst_123 = arith.constant dense<0xFF800000> : vector<8xf32>
    %337 = vector.multi_reduction <maximumf>, %336, %cst_123 [1] : vector<8x8xf32> to vector<8xf32>
    %338 = vector.shape_cast %337 : vector<8xf32> to vector<8x1xf32>
    %339 = vector.broadcast %338 : vector<8x1xf32> to vector<8x8xf32>
    %340 = arith.subf %336, %339 : vector<8x8xf32>
    %341 = math.exp %340 : vector<8x8xf32>
    %cst_124 = arith.constant dense<0.000000e+00> : vector<8xf32>
    %342 = vector.multi_reduction <add>, %341, %cst_124 [1] : vector<8x8xf32> to vector<8xf32>
    %343 = vector.shape_cast %342 : vector<8xf32> to vector<8x1xf32>
    %344 = tpu.reciprocal %343 {approx = true} : vector<8x1xf32> -> vector<8x1xf32>
    %345 = vector.broadcast %344 : vector<8x1xf32> to vector<8x8xf32>
    %346 = arith.mulf %341, %345 : vector<8x8xf32>
    %cst_125 = arith.constant dense<0.000000e+00> : vector<8x8xf32>
    %347 = tpu.matmul %346, %331, %cst_125 {dimension_numbers = #tpu.dot_dimension_numbers<[1], [0], [0], [1], [0, 0, 1, 1], [], []>} : vector<8x8xf32>, vector<8x8xf32>, vector<8x8xf32> -> vector<8x8xf32>
    %348 = vector.extract_strided_slice %287 {offsets = [0, 24], sizes = [8, 8], strides = [1, 1]} : vector<16x32xf32> to vector<8x8xf32>
    %349 = vector.extract_strided_slice %288 {offsets = [0, 24], sizes = [8, 8], strides = [1, 1]} : vector<16x32xf32> to vector<8x8xf32>
    %350 = vector.extract_strided_slice %289 {offsets = [0, 24], sizes = [8, 8], strides = [1, 1]} : vector<16x32xf32> to vector<8x8xf32>
    %cst_126 = arith.constant dense<0.000000e+00> : vector<8x8xf32>
    %351 = tpu.matmul %348, %349, %cst_126 {dimension_numbers = #tpu.dot_dimension_numbers<[1], [1], [0], [0], [0, 0, 1, 0], [], []>} : vector<8x8xf32>, vector<8x8xf32>, vector<8x8xf32> -> vector<8x8xf32>
    %cst_127 = arith.constant 0.353553385 : f32
    %352 = vector.broadcast %cst_127 : f32 to vector<8x8xf32>
    %353 = arith.mulf %351, %352 : vector<8x8xf32>
    %354 = vector.broadcast %290 : vector<1x8xf32> to vector<8x8xf32>
    %355 = arith.addf %353, %354 : vector<8x8xf32>
    %cst_128 = arith.constant dense<0xFF800000> : vector<8xf32>
    %356 = vector.multi_reduction <maximumf>, %355, %cst_128 [1] : vector<8x8xf32> to vector<8xf32>
    %357 = vector.shape_cast %356 : vector<8xf32> to vector<8x1xf32>
    %358 = vector.broadcast %357 : vector<8x1xf32> to vector<8x8xf32>
    %359 = arith.subf %355, %358 : vector<8x8xf32>
    %360 = math.exp %359 : vector<8x8xf32>
    %cst_129 = arith.constant dense<0.000000e+00> : vector<8xf32>
    %361 = vector.multi_reduction <add>, %360, %cst_129 [1] : vector<8x8xf32> to vector<8xf32>
    %362 = vector.shape_cast %361 : vector<8xf32> to vector<8x1xf32>
    %363 = tpu.reciprocal %362 {approx = true} : vector<8x1xf32> -> vector<8x1xf32>
    %364 = vector.broadcast %363 : vector<8x1xf32> to vector<8x8xf32>
    %365 = arith.mulf %360, %364 : vector<8x8xf32>
    %cst_130 = arith.constant dense<0.000000e+00> : vector<8x8xf32>
    %366 = tpu.matmul %365, %350, %cst_130 {dimension_numbers = #tpu.dot_dimension_numbers<[1], [0], [0], [1], [0, 0, 1, 1], [], []>} : vector<8x8xf32>, vector<8x8xf32>, vector<8x8xf32> -> vector<8x8xf32>
    %367 = tpu.concatenate %309, %328, %347, %366 in 1 : vector<8x8xf32>, vector<8x8xf32>, vector<8x8xf32>, vector<8x8xf32> -> vector<8x32xf32>
    %368 = vector.extract_strided_slice %23 {offsets = [1, 0], sizes = [1, 8], strides = [1, 1]} : vector<2x8xf32> to vector<1x8xf32>
    %369 = vector.extract_strided_slice %287 {offsets = [8, 0], sizes = [8, 8], strides = [1, 1]} : vector<16x32xf32> to vector<8x8xf32>
    %370 = vector.extract_strided_slice %288 {offsets = [8, 0], sizes = [8, 8], strides = [1, 1]} : vector<16x32xf32> to vector<8x8xf32>
    %371 = vector.extract_strided_slice %289 {offsets = [8, 0], sizes = [8, 8], strides = [1, 1]} : vector<16x32xf32> to vector<8x8xf32>
    %cst_131 = arith.constant dense<0.000000e+00> : vector<8x8xf32>
    %372 = tpu.matmul %369, %370, %cst_131 {dimension_numbers = #tpu.dot_dimension_numbers<[1], [1], [0], [0], [0, 0, 1, 0], [], []>} : vector<8x8xf32>, vector<8x8xf32>, vector<8x8xf32> -> vector<8x8xf32>
    %cst_132 = arith.constant 0.353553385 : f32
    %373 = vector.broadcast %cst_132 : f32 to vector<8x8xf32>
    %374 = arith.mulf %372, %373 : vector<8x8xf32>
    %375 = vector.broadcast %368 : vector<1x8xf32> to vector<8x8xf32>
    %376 = arith.addf %374, %375 : vector<8x8xf32>
    %cst_133 = arith.constant dense<0xFF800000> : vector<8xf32>
    %377 = vector.multi_reduction <maximumf>, %376, %cst_133 [1] : vector<8x8xf32> to vector<8xf32>
    %378 = vector.shape_cast %377 : vector<8xf32> to vector<8x1xf32>
    %379 = vector.broadcast %378 : vector<8x1xf32> to vector<8x8xf32>
    %380 = arith.subf %376, %379 : vector<8x8xf32>
    %381 = math.exp %380 : vector<8x8xf32>
    %cst_134 = arith.constant dense<0.000000e+00> : vector<8xf32>
    %382 = vector.multi_reduction <add>, %381, %cst_134 [1] : vector<8x8xf32> to vector<8xf32>
    %383 = vector.shape_cast %382 : vector<8xf32> to vector<8x1xf32>
    %384 = tpu.reciprocal %383 {approx = true} : vector<8x1xf32> -> vector<8x1xf32>
    %385 = vector.broadcast %384 : vector<8x1xf32> to vector<8x8xf32>
    %386 = arith.mulf %381, %385 : vector<8x8xf32>
    %cst_135 = arith.constant dense<0.000000e+00> : vector<8x8xf32>
    %387 = tpu.matmul %386, %371, %cst_135 {dimension_numbers = #tpu.dot_dimension_numbers<[1], [0], [0], [1], [0, 0, 1, 1], [], []>} : vector<8x8xf32>, vector<8x8xf32>, vector<8x8xf32> -> vector<8x8xf32>
    %388 = vector.extract_strided_slice %287 {offsets = [8, 8], sizes = [8, 8], strides = [1, 1]} : vector<16x32xf32> to vector<8x8xf32>
    %389 = vector.extract_strided_slice %288 {offsets = [8, 8], sizes = [8, 8], strides = [1, 1]} : vector<16x32xf32> to vector<8x8xf32>
    %390 = vector.extract_strided_slice %289 {offsets = [8, 8], sizes = [8, 8], strides = [1, 1]} : vector<16x32xf32> to vector<8x8xf32>
    %cst_136 = arith.constant dense<0.000000e+00> : vector<8x8xf32>
    %391 = tpu.matmul %388, %389, %cst_136 {dimension_numbers = #tpu.dot_dimension_numbers<[1], [1], [0], [0], [0, 0, 1, 0], [], []>} : vector<8x8xf32>, vector<8x8xf32>, vector<8x8xf32> -> vector<8x8xf32>
    %cst_137 = arith.constant 0.353553385 : f32
    %392 = vector.broadcast %cst_137 : f32 to vector<8x8xf32>
    %393 = arith.mulf %391, %392 : vector<8x8xf32>
    %394 = vector.broadcast %368 : vector<1x8xf32> to vector<8x8xf32>
    %395 = arith.addf %393, %394 : vector<8x8xf32>
    %cst_138 = arith.constant dense<0xFF800000> : vector<8xf32>
    %396 = vector.multi_reduction <maximumf>, %395, %cst_138 [1] : vector<8x8xf32> to vector<8xf32>
    %397 = vector.shape_cast %396 : vector<8xf32> to vector<8x1xf32>
    %398 = vector.broadcast %397 : vector<8x1xf32> to vector<8x8xf32>
    %399 = arith.subf %395, %398 : vector<8x8xf32>
    %400 = math.exp %399 : vector<8x8xf32>
    %cst_139 = arith.constant dense<0.000000e+00> : vector<8xf32>
    %401 = vector.multi_reduction <add>, %400, %cst_139 [1] : vector<8x8xf32> to vector<8xf32>
    %402 = vector.shape_cast %401 : vector<8xf32> to vector<8x1xf32>
    %403 = tpu.reciprocal %402 {approx = true} : vector<8x1xf32> -> vector<8x1xf32>
    %404 = vector.broadcast %403 : vector<8x1xf32> to vector<8x8xf32>
    %405 = arith.mulf %400, %404 : vector<8x8xf32>
    %cst_140 = arith.constant dense<0.000000e+00> : vector<8x8xf32>
    %406 = tpu.matmul %405, %390, %cst_140 {dimension_numbers = #tpu.dot_dimension_numbers<[1], [0], [0], [1], [0, 0, 1, 1], [], []>} : vector<8x8xf32>, vector<8x8xf32>, vector<8x8xf32> -> vector<8x8xf32>
    %407 = vector.extract_strided_slice %287 {offsets = [8, 16], sizes = [8, 8], strides = [1, 1]} : vector<16x32xf32> to vector<8x8xf32>
    %408 = vector.extract_strided_slice %288 {offsets = [8, 16], sizes = [8, 8], strides = [1, 1]} : vector<16x32xf32> to vector<8x8xf32>
    %409 = vector.extract_strided_slice %289 {offsets = [8, 16], sizes = [8, 8], strides = [1, 1]} : vector<16x32xf32> to vector<8x8xf32>
    %cst_141 = arith.constant dense<0.000000e+00> : vector<8x8xf32>
    %410 = tpu.matmul %407, %408, %cst_141 {dimension_numbers = #tpu.dot_dimension_numbers<[1], [1], [0], [0], [0, 0, 1, 0], [], []>} : vector<8x8xf32>, vector<8x8xf32>, vector<8x8xf32> -> vector<8x8xf32>
    %cst_142 = arith.constant 0.353553385 : f32
    %411 = vector.broadcast %cst_142 : f32 to vector<8x8xf32>
    %412 = arith.mulf %410, %411 : vector<8x8xf32>
    %413 = vector.broadcast %368 : vector<1x8xf32> to vector<8x8xf32>
    %414 = arith.addf %412, %413 : vector<8x8xf32>
    %cst_143 = arith.constant dense<0xFF800000> : vector<8xf32>
    %415 = vector.multi_reduction <maximumf>, %414, %cst_143 [1] : vector<8x8xf32> to vector<8xf32>
    %416 = vector.shape_cast %415 : vector<8xf32> to vector<8x1xf32>
    %417 = vector.broadcast %416 : vector<8x1xf32> to vector<8x8xf32>
    %418 = arith.subf %414, %417 : vector<8x8xf32>
    %419 = math.exp %418 : vector<8x8xf32>
    %cst_144 = arith.constant dense<0.000000e+00> : vector<8xf32>
    %420 = vector.multi_reduction <add>, %419, %cst_144 [1] : vector<8x8xf32> to vector<8xf32>
    %421 = vector.shape_cast %420 : vector<8xf32> to vector<8x1xf32>
    %422 = tpu.reciprocal %421 {approx = true} : vector<8x1xf32> -> vector<8x1xf32>
    %423 = vector.broadcast %422 : vector<8x1xf32> to vector<8x8xf32>
    %424 = arith.mulf %419, %423 : vector<8x8xf32>
    %cst_145 = arith.constant dense<0.000000e+00> : vector<8x8xf32>
    %425 = tpu.matmul %424, %409, %cst_145 {dimension_numbers = #tpu.dot_dimension_numbers<[1], [0], [0], [1], [0, 0, 1, 1], [], []>} : vector<8x8xf32>, vector<8x8xf32>, vector<8x8xf32> -> vector<8x8xf32>
    %426 = vector.extract_strided_slice %287 {offsets = [8, 24], sizes = [8, 8], strides = [1, 1]} : vector<16x32xf32> to vector<8x8xf32>
    %427 = vector.extract_strided_slice %288 {offsets = [8, 24], sizes = [8, 8], strides = [1, 1]} : vector<16x32xf32> to vector<8x8xf32>
    %428 = vector.extract_strided_slice %289 {offsets = [8, 24], sizes = [8, 8], strides = [1, 1]} : vector<16x32xf32> to vector<8x8xf32>
    %cst_146 = arith.constant dense<0.000000e+00> : vector<8x8xf32>
    %429 = tpu.matmul %426, %427, %cst_146 {dimension_numbers = #tpu.dot_dimension_numbers<[1], [1], [0], [0], [0, 0, 1, 0], [], []>} : vector<8x8xf32>, vector<8x8xf32>, vector<8x8xf32> -> vector<8x8xf32>
    %cst_147 = arith.constant 0.353553385 : f32
    %430 = vector.broadcast %cst_147 : f32 to vector<8x8xf32>
    %431 = arith.mulf %429, %430 : vector<8x8xf32>
    %432 = vector.broadcast %368 : vector<1x8xf32> to vector<8x8xf32>
    %433 = arith.addf %431, %432 : vector<8x8xf32>
    %cst_148 = arith.constant dense<0xFF800000> : vector<8xf32>
    %434 = vector.multi_reduction <maximumf>, %433, %cst_148 [1] : vector<8x8xf32> to vector<8xf32>
    %435 = vector.shape_cast %434 : vector<8xf32> to vector<8x1xf32>
    %436 = vector.broadcast %435 : vector<8x1xf32> to vector<8x8xf32>
    %437 = arith.subf %433, %436 : vector<8x8xf32>
    %438 = math.exp %437 : vector<8x8xf32>
    %cst_149 = arith.constant dense<0.000000e+00> : vector<8xf32>
    %439 = vector.multi_reduction <add>, %438, %cst_149 [1] : vector<8x8xf32> to vector<8xf32>
    %440 = vector.shape_cast %439 : vector<8xf32> to vector<8x1xf32>
    %441 = tpu.reciprocal %440 {approx = true} : vector<8x1xf32> -> vector<8x1xf32>
    %442 = vector.broadcast %441 : vector<8x1xf32> to vector<8x8xf32>
    %443 = arith.mulf %438, %442 : vector<8x8xf32>
    %cst_150 = arith.constant dense<0.000000e+00> : vector<8x8xf32>
    %444 = tpu.matmul %443, %428, %cst_150 {dimension_numbers = #tpu.dot_dimension_numbers<[1], [0], [0], [1], [0, 0, 1, 1], [], []>} : vector<8x8xf32>, vector<8x8xf32>, vector<8x8xf32> -> vector<8x8xf32>
    %445 = tpu.concatenate %387, %406, %425, %444 in 1 : vector<8x8xf32>, vector<8x8xf32>, vector<8x8xf32>, vector<8x8xf32> -> vector<8x32xf32>
    %446 = tpu.concatenate %367, %445 in 0 : vector<8x32xf32>, vector<8x32xf32> -> vector<16x32xf32>
    %c1_151 = arith.constant 1 : index
    %c0_152 = arith.constant 0 : index
    %c0_153 = arith.constant 0 : index
    %447 = vector.load %arg6[%c1_151, %c0_152, %c0_153] : memref<2x32x32xbf16, #tpu.memory_space<vmem>>, vector<1x32x32xbf16>
    %448 = vector.shape_cast %447 : vector<1x32x32xbf16> to vector<32x32xbf16>
    %c1_154 = arith.constant 1 : index
    %c0_155 = arith.constant 0 : index
    %c0_156 = arith.constant 0 : index
    %449 = vector.load %arg7[%c1_154, %c0_155, %c0_156] : memref<2x1x32xf32, #tpu.memory_space<vmem>>, vector<1x1x32xf32>
    %450 = vector.shape_cast %449 : vector<1x1x32xf32> to vector<1x32xf32>
    %451 = arith.truncf %446 : vector<16x32xf32> to vector<16x32xbf16>
    %cst_157 = arith.constant dense<0.000000e+00> : vector<16x32xf32>
    %452 = tpu.matmul %451, %448, %cst_157 {dimension_numbers = #tpu.dot_dimension_numbers<[1], [0], [0], [1], [0, 0, 1, 1], [], []>} : vector<16x32xbf16>, vector<32x32xbf16>, vector<16x32xf32> -> vector<16x32xf32>
    %453 = vector.broadcast %450 : vector<1x32xf32> to vector<16x32xf32>
    %454 = arith.addf %452, %453 : vector<16x32xf32>
    %455 = arith.addf %454, %278 : vector<16x32xf32>
    %c1_158 = arith.constant 1 : index
    %c0_159 = arith.constant 0 : index
    %c0_160 = arith.constant 0 : index
    %456 = vector.load %arg8[%c1_158, %c0_159, %c0_160] : memref<2x1x32xf32, #tpu.memory_space<vmem>>, vector<1x1x32xf32>
    %457 = vector.shape_cast %456 : vector<1x1x32xf32> to vector<1x32xf32>
    %c1_161 = arith.constant 1 : index
    %c0_162 = arith.constant 0 : index
    %c0_163 = arith.constant 0 : index
    %458 = vector.load %arg9[%c1_161, %c0_162, %c0_163] : memref<2x1x32xf32, #tpu.memory_space<vmem>>, vector<1x1x32xf32>
    %459 = vector.shape_cast %458 : vector<1x1x32xf32> to vector<1x32xf32>
    %cst_164 = arith.constant dense<0.000000e+00> : vector<16xf32>
    %460 = vector.multi_reduction <add>, %455, %cst_164 [1] : vector<16x32xf32> to vector<16xf32>
    %461 = vector.shape_cast %460 : vector<16xf32> to vector<16x1xf32>
    %cst_165 = arith.constant 3.200000e+01 : f32
    %462 = vector.broadcast %cst_165 : f32 to vector<16x1xf32>
    %463 = arith.divf %461, %462 : vector<16x1xf32>
    %464 = vector.broadcast %463 : vector<16x1xf32> to vector<16x32xf32>
    %465 = arith.subf %455, %464 : vector<16x32xf32>
    %466 = arith.mulf %465, %465 : vector<16x32xf32>
    %cst_166 = arith.constant dense<0.000000e+00> : vector<16xf32>
    %467 = vector.multi_reduction <add>, %466, %cst_166 [1] : vector<16x32xf32> to vector<16xf32>
    %468 = vector.shape_cast %467 : vector<16xf32> to vector<16x1xf32>
    %cst_167 = arith.constant 3.200000e+01 : f32
    %469 = vector.broadcast %cst_167 : f32 to vector<16x1xf32>
    %470 = arith.divf %468, %469 : vector<16x1xf32>
    %cst_168 = arith.constant 9.99999996E-13 : f32
    %471 = vector.broadcast %cst_168 : f32 to vector<16x1xf32>
    %472 = arith.addf %470, %471 : vector<16x1xf32>
    %473 = math.rsqrt %472 : vector<16x1xf32>
    %474 = vector.broadcast %473 : vector<16x1xf32> to vector<16x32xf32>
    %475 = arith.mulf %465, %474 : vector<16x32xf32>
    %476 = vector.broadcast %457 : vector<1x32xf32> to vector<16x32xf32>
    %477 = arith.mulf %475, %476 : vector<16x32xf32>
    %478 = vector.broadcast %459 : vector<1x32xf32> to vector<16x32xf32>
    %479 = arith.addf %477, %478 : vector<16x32xf32>
    %c1_169 = arith.constant 1 : index
    %c0_170 = arith.constant 0 : index
    %c0_171 = arith.constant 0 : index
    %480 = vector.load %arg10[%c1_169, %c0_170, %c0_171] : memref<2x32x64xbf16, #tpu.memory_space<vmem>>, vector<1x32x64xbf16>
    %481 = vector.shape_cast %480 : vector<1x32x64xbf16> to vector<32x64xbf16>
    %c1_172 = arith.constant 1 : index
    %c0_173 = arith.constant 0 : index
    %c0_174 = arith.constant 0 : index
    %482 = vector.load %arg11[%c1_172, %c0_173, %c0_174] : memref<2x1x64xf32, #tpu.memory_space<vmem>>, vector<1x1x64xf32>
    %483 = vector.shape_cast %482 : vector<1x1x64xf32> to vector<1x64xf32>
    %484 = arith.truncf %479 : vector<16x32xf32> to vector<16x32xbf16>
    %cst_175 = arith.constant dense<0.000000e+00> : vector<16x64xf32>
    %485 = tpu.matmul %484, %481, %cst_175 {dimension_numbers = #tpu.dot_dimension_numbers<[1], [0], [0], [1], [0, 0, 1, 1], [], []>} : vector<16x32xbf16>, vector<32x64xbf16>, vector<16x64xf32> -> vector<16x64xf32>
    %486 = vector.broadcast %483 : vector<1x64xf32> to vector<16x64xf32>
    %487 = arith.addf %485, %486 : vector<16x64xf32>
    %cst_176 = arith.constant 5.000000e-01 : f32
    %488 = vector.broadcast %cst_176 : f32 to vector<16x64xf32>
    %489 = arith.mulf %488, %487 : vector<16x64xf32>
    %cst_177 = arith.constant 4.471500e-02 : f32
    %490 = vector.broadcast %cst_177 : f32 to vector<16x64xf32>
    %491 = arith.mulf %490, %487 : vector<16x64xf32>
    %492 = arith.mulf %491, %487 : vector<16x64xf32>
    %493 = arith.mulf %492, %487 : vector<16x64xf32>
    %494 = arith.addf %487, %493 : vector<16x64xf32>
    %cst_178 = arith.constant 0.797884583 : f32
    %495 = vector.broadcast %cst_178 : f32 to vector<16x64xf32>
    %496 = arith.mulf %495, %494 : vector<16x64xf32>
    %497 = math.tanh %496 : vector<16x64xf32>
    %cst_179 = arith.constant 1.000000e+00 : f32
    %498 = vector.broadcast %cst_179 : f32 to vector<16x64xf32>
    %499 = arith.addf %498, %497 : vector<16x64xf32>
    %500 = arith.mulf %489, %499 : vector<16x64xf32>
    %c1_180 = arith.constant 1 : index
    %c0_181 = arith.constant 0 : index
    %c0_182 = arith.constant 0 : index
    %501 = vector.load %arg12[%c1_180, %c0_181, %c0_182] : memref<2x64x32xbf16, #tpu.memory_space<vmem>>, vector<1x64x32xbf16>
    %502 = vector.shape_cast %501 : vector<1x64x32xbf16> to vector<64x32xbf16>
    %c1_183 = arith.constant 1 : index
    %c0_184 = arith.constant 0 : index
    %c0_185 = arith.constant 0 : index
    %503 = vector.load %arg13[%c1_183, %c0_184, %c0_185] : memref<2x1x32xf32, #tpu.memory_space<vmem>>, vector<1x1x32xf32>
    %504 = vector.shape_cast %503 : vector<1x1x32xf32> to vector<1x32xf32>
    %505 = arith.truncf %500 : vector<16x64xf32> to vector<16x64xbf16>
    %cst_186 = arith.constant dense<0.000000e+00> : vector<16x32xf32>
    %506 = tpu.matmul %505, %502, %cst_186 {dimension_numbers = #tpu.dot_dimension_numbers<[1], [0], [0], [1], [0, 0, 1, 1], [], []>} : vector<16x64xbf16>, vector<64x32xbf16>, vector<16x32xf32> -> vector<16x32xf32>
    %507 = vector.broadcast %504 : vector<1x32xf32> to vector<16x32xf32>
    %508 = arith.addf %506, %507 : vector<16x32xf32>
    %509 = arith.addf %508, %479 : vector<16x32xf32>
    %c1_187 = arith.constant 1 : index
    %c0_188 = arith.constant 0 : index
    %c0_189 = arith.constant 0 : index
    %510 = vector.load %arg14[%c1_187, %c0_188, %c0_189] : memref<2x1x32xf32, #tpu.memory_space<vmem>>, vector<1x1x32xf32>
    %511 = vector.shape_cast %510 : vector<1x1x32xf32> to vector<1x32xf32>
    %c1_190 = arith.constant 1 : index
    %c0_191 = arith.constant 0 : index
    %c0_192 = arith.constant 0 : index
    %512 = vector.load %arg15[%c1_190, %c0_191, %c0_192] : memref<2x1x32xf32, #tpu.memory_space<vmem>>, vector<1x1x32xf32>
    %513 = vector.shape_cast %512 : vector<1x1x32xf32> to vector<1x32xf32>
    %cst_193 = arith.constant dense<0.000000e+00> : vector<16xf32>
    %514 = vector.multi_reduction <add>, %509, %cst_193 [1] : vector<16x32xf32> to vector<16xf32>
    %515 = vector.shape_cast %514 : vector<16xf32> to vector<16x1xf32>
    %cst_194 = arith.constant 3.200000e+01 : f32
    %516 = vector.broadcast %cst_194 : f32 to vector<16x1xf32>
    %517 = arith.divf %515, %516 : vector<16x1xf32>
    %518 = vector.broadcast %517 : vector<16x1xf32> to vector<16x32xf32>
    %519 = arith.subf %509, %518 : vector<16x32xf32>
    %520 = arith.mulf %519, %519 : vector<16x32xf32>
    %cst_195 = arith.constant dense<0.000000e+00> : vector<16xf32>
    %521 = vector.multi_reduction <add>, %520, %cst_195 [1] : vector<16x32xf32> to vector<16xf32>
    %522 = vector.shape_cast %521 : vector<16xf32> to vector<16x1xf32>
    %cst_196 = arith.constant 3.200000e+01 : f32
    %523 = vector.broadcast %cst_196 : f32 to vector<16x1xf32>
    %524 = arith.divf %522, %523 : vector<16x1xf32>
    %cst_197 = arith.constant 9.99999996E-13 : f32
    %525 = vector.broadcast %cst_197 : f32 to vector<16x1xf32>
    %526 = arith.addf %524, %525 : vector<16x1xf32>
    %527 = math.rsqrt %526 : vector<16x1xf32>
    %528 = vector.broadcast %527 : vector<16x1xf32> to vector<16x32xf32>
    %529 = arith.mulf %519, %528 : vector<16x32xf32>
    %530 = vector.broadcast %511 : vector<1x32xf32> to vector<16x32xf32>
    %531 = arith.mulf %529, %530 : vector<16x32xf32>
    %532 = vector.broadcast %513 : vector<1x32xf32> to vector<16x32xf32>
    %533 = arith.addf %531, %532 : vector<16x32xf32>
    %534 = vector.extract_strided_slice %533 {offsets = [0, 0], sizes = [1, 32], strides = [1, 1]} : vector<16x32xf32> to vector<1x32xf32>
    %535 = vector.extract_strided_slice %533 {offsets = [8, 0], sizes = [1, 32], strides = [1, 1]} : vector<16x32xf32> to vector<1x32xf32>
    %536 = tpu.concatenate %534, %535 in 0 : vector<1x32xf32>, vector<1x32xf32> -> vector<2x32xf32>
    %c0_198 = arith.constant 0 : index
    %c0_199 = arith.constant 0 : index
    %537 = vector.load %arg16[%c0_198, %c0_199] : memref<32x32xbf16, #tpu.memory_space<vmem>>, vector<32x32xbf16>
    %c0_200 = arith.constant 0 : index
    %c0_201 = arith.constant 0 : index
    %538 = vector.load %arg17[%c0_200, %c0_201] : memref<1x32xf32, #tpu.memory_space<vmem>>, vector<1x32xf32>
    %539 = arith.truncf %536 : vector<2x32xf32> to vector<2x32xbf16>
    %cst_202 = arith.constant dense<0.000000e+00> : vector<2x32xf32>
    %540 = tpu.matmul %539, %537, %cst_202 {dimension_numbers = #tpu.dot_dimension_numbers<[1], [0], [0], [1], [0, 0, 1, 1], [], []>} : vector<2x32xbf16>, vector<32x32xbf16>, vector<2x32xf32> -> vector<2x32xf32>
    %541 = vector.broadcast %538 : vector<1x32xf32> to vector<2x32xf32>
    %542 = arith.addf %540, %541 : vector<2x32xf32>
    %543 = math.tanh %542 : vector<2x32xf32>
    %c0_203 = arith.constant 0 : index
    %c0_204 = arith.constant 0 : index
    %544 = vector.load %arg18[%c0_203, %c0_204] : memref<32x256xbf16, #tpu.memory_space<vmem>>, vector<32x256xbf16>
    %c0_205 = arith.constant 0 : index
    %c0_206 = arith.constant 0 : index
    %545 = vector.load %arg19[%c0_205, %c0_206] : memref<1x256xf32, #tpu.memory_space<vmem>>, vector<1x256xf32>
    %546 = arith.truncf %543 : vector<2x32xf32> to vector<2x32xbf16>
    %cst_207 = arith.constant dense<0.000000e+00> : vector<2x256xf32>
    %547 = tpu.matmul %546, %544, %cst_207 {dimension_numbers = #tpu.dot_dimension_numbers<[1], [0], [0], [1], [0, 0, 1, 1], [], []>} : vector<2x32xbf16>, vector<32x256xbf16>, vector<2x256xf32> -> vector<2x256xf32>
    %548 = vector.broadcast %545 : vector<1x256xf32> to vector<2x256xf32>
    %549 = arith.addf %547, %548 : vector<2x256xf32>
    %cst_208 = arith.constant 0.000000e+00 : f32
    %550 = vector.broadcast %cst_208 : f32 to vector<2x256xf32>
    %551 = arith.maximumf %549, %550 : vector<2x256xf32>
    %c0_209 = arith.constant 0 : index
    %c0_210 = arith.constant 0 : index
    %552 = vector.load %arg20[%c0_209, %c0_210] : memref<256x3xbf16, #tpu.memory_space<vmem>>, vector<256x3xbf16>
    %c0_211 = arith.constant 0 : index
    %c0_212 = arith.constant 0 : index
    %553 = vector.load %arg21[%c0_211, %c0_212] : memref<1x3xf32, #tpu.memory_space<vmem>>, vector<1x3xf32>
    %554 = arith.truncf %551 : vector<2x256xf32> to vector<2x256xbf16>
    %cst_213 = arith.constant dense<0.000000e+00> : vector<2x3xf32>
    %555 = tpu.matmul %554, %552, %cst_213 {dimension_numbers = #tpu.dot_dimension_numbers<[1], [0], [0], [1], [0, 0, 1, 1], [], []>} : vector<2x256xbf16>, vector<256x3xbf16>, vector<2x3xf32> -> vector<2x3xf32>
    %556 = vector.broadcast %553 : vector<1x3xf32> to vector<2x3xf32>
    %557 = arith.addf %555, %556 : vector<2x3xf32>
    %c0_214 = arith.constant 0 : index
    %c0_215 = arith.constant 0 : index
    %558 = vector.load %arg22[%c0_214, %c0_215] : memref<2x3xf32, #tpu.memory_space<vmem>>, vector<2x3xf32>
    tpu.vector_store %arg22[%c0_214, %c0_215], %557 {strides = array<i32>} : memref<2x3xf32, #tpu.memory_space<vmem>>, vector<2x3xf32>,
    return
  }
}

</mosaic_0001>

<bundles_post_ra>
// kernel: bert_classifier_forward.1
= control target key start
LH: loop header
LB: loop body
LE: loop exit
PB: predicated region body
PF: predicated region fallthrough
CT: control target
= control target key end

     0   :  { %s5516_s0 = inlined_call_operand.vmem [shape: f32[16,32], index: 0, kind: input, shape index: {}]   ;;  %s5517_s1 = inlined_call_operand.vmem [shape: f32[2,8], index: 1, kind: input, shape index: {}]   ;;  %s5518_s2 = inlined_call_operand.vmem [shape: f32[1,32], index: 2, kind: input, shape index: {}]   ;;  %s5519_s3 = inlined_call_operand.vmem [shape: f32[1,32], index: 3, kind: input, shape index: {}]   ;;  %s5520_s4 = inlined_call_operand.vmem [shape: bf16[2,32,96], index: 4, kind: input, shape index: {}]   ;;  %s5521_s5 = inlined_call_operand.vmem [shape: f32[2,1,96], index: 5, kind: input, shape index: {}]   ;;  %s5522_s6 = inlined_call_operand.vmem [shape: bf16[2,32,32], index: 6, kind: input, shape index: {}]   ;;  %s5523_s7 = inlined_call_operand.vmem [shape: f32[2,1,32], index: 7, kind: input, shape index: {}]   ;;  %s5524_s8 = inlined_call_operand.vmem [shape: f32[2,1,32], index: 8, kind: input, shape index: {}]   ;;  %s5525_s9 = inlined_call_operand.vmem [shape: f32[2,1,32], index: 9, kind: input, shape index: {}]   ;;  %s5526_s10 = inlined_call_operand.vmem [shape: bf16[2,32,64], index: 10, kind: input, shape index: {}]   ;;  %s5527_s11 = inlined_call_operand.vmem [shape: f32[2,1,64], index: 11, kind: input, shape index: {}]   ;;  %s5528_s12 = inlined_call_operand.vmem [shape: bf16[2,64,32], index: 12, kind: input, shape index: {}]   ;;  %s5529_s13 = inlined_call_operand.vmem [shape: f32[2,1,32], index: 13, kind: input, shape index: {}]   ;;  %s5530_s14 = inlined_call_operand.vmem [shape: f32[2,1,32], index: 14, kind: input, shape index: {}]   ;;  %s5531_s15 = inlined_call_operand.vmem [shape: f32[2,1,32], index: 15, kind: input, shape index: {}]   ;;  %s5532_s16 = inlined_call_operand.vmem [shape: bf16[32,32], index: 16, kind: input, shape index: {}]   ;;  %s5533_s17 = inlined_call_operand.vmem [shape: f32[1,32], index: 17, kind: input, shape index: {}]   ;;  %s5534_s18 = inlined_call_operand.vmem [shape: bf16[32,256], index: 18, kind: input, shape index: {}]   ;;  %s5535_s19 = inlined_call_operand.vmem [shape: f32[1,256], index: 19, kind: input, shape index: {}]   ;;  %s5536_s20 = inlined_call_operand.vmem [shape: bf16[256,3], index: 20, kind: input, shape index: {}]   ;;  %s5537_s21 = inlined_call_operand.vmem [shape: f32[1,3], index: 21, kind: input, shape index: {}]   ;;  %s5538_s22 = inlined_call_operand.hbm [shape: f32[2,3], index: 22, kind: output, shape index: {}]  }
   0x1   :  { %5560 = sst [smem:[#allocation5_spill]] %s5516_s0 }
   0x2   :  { %5561 = sst [smem:[#allocation6_spill]] %s5517_s1 }
   0x3   :  { %5562 = sst [smem:[#allocation7_spill]] %s5518_s2 }
   0x4   :  { %5563 = sst [smem:[#allocation8_spill]] %s5519_s3 }
   0x5   :  { %5564 = sst [smem:[#allocation9_spill]] %s5520_s4 }
   0x6   :  { %5565 = sst [smem:[#allocation10_spill]] %s5521_s5 }
   0x7   :  { %5566 = sst [smem:[#allocation11_spill]] %s5522_s6 }
   0x8   :  { %s5567_s29 = sld [smem:[#allocation5_spill]]  ;;  %vm77_vm0 = vcmask 261120  }
   0xe   :  { %v73_v0 = vld [vmem:[%s5567_s29] sm:$0xff]  ;;  %v74_v1 = vld [vmem:[%s5567_s29 + $0x8] sm:$0xff] }
   0xf   :  { %v78_v2 = vsel %vm77_vm0, %v73_v0, 0.0  ;;  %v81_v3 = vsel %vm77_vm0, %v74_v1, 0.0 }
  0x10   :  { %79 = vadd.xlane.f32.xlu0 %v78_v2 }
  0x14   :  { %82 = vadd.xlane.f32.xlu0 %v81_v3 }
  0x15   :  { %27 = vsyncpa [#allocation3], 0  ;;  %s5568_s1 = sld [smem:[#allocation9_spill]]  ;;  %v4734_v15 = vmov 0.0   ;;  %vm4735_vm1 = vmmov 0   ;;  %s5569_s26 = sld [smem:[#allocation7_spill]]  ;;  %v269_v42 = vlaneseq }
  0x16   :  { %4284 = vmatprep.subr.bf16.mxu0 %v4734_v15  ;;  %4288 = vmatprep.mubr.msk.bf16.mxu0 %vm4735_vm1, %v4734_v15  ;;  %s5570_s3 = sld [smem:[#allocation8_spill]]  ;;  %s5571_s30 = sld [smem:[#allocation10_spill]]  ;;  %vm193_vm2 = vcmask 64512   ;;  %vm875_vm3 = vcmask 130048   ;;  %vm877_vm4 = vcmask 195584   ;;  %vm1805_vm5 = vcmask 523264  }
  0x17   :  { %4292 = vmatprep.subr.mxu1 %v4734_v15  ;;  %4294 = vmatprep.mubr.msk.f32.mxu1 %vm4735_vm1, %v4734_v15  ;;  %s4736_s4 = smov 96   ;;  %s4737_s0 = smov 88   ;;  %v4935_v43 = vshrl.u32 %v269_v42, 7  ;;  %vm3673_vm6 = vcmask 1040384   ;;  %vm4003_vm7 = vcmask 17408  }
  0x18   :  { %s5558_s23 = smov 80   ;;  %s4739_s5 = smov 72  }
  0x19   :  { %s4740_s24 = smov 120   ;;  %s5556_s6 = smov 112   ;;  %v271_v44 = vsub.s32 0, %v4935_v43 }
  0x1a   :  { %s5554_s25 = smov 104   ;;  %s5572_s27 = sld [smem:[#allocation6_spill]] }
  0x1b   :  { %v4572_v14 = vld [vmem:[%s5568_s1] sm:$0xff]   ;;  %v4573_v16 = vld [vmem:[%s5568_s1 + $0x8] sm:$0xff]   ;;  %s5549_s28 = smov 56   ;;  %s5543_s29 = smov 40  }
  0x1c   :  { %4285 = vmatpush3.bf16.msra.mxu0 %v4572_v14  ;;  %v4019_v25 = vld [vmem:[%s5569_s26] ss:$0 sm:$0xff]  ;;  %s5547_s26 = smov 48   ;;  %s5552_s2 = smov 16  }
  0x1d   :  { %4286 = vmatprep.subr.bf16.mxu0 %v4734_v15  ;;  %v4020_v29 = vld [vmem:[%s5570_s3] ss:$0 sm:$0xff]  ;;  %s5545_s3 = smov 64  }
  0x1e   :  { %v4021_v34 = vld [vmem:[%s5571_s30] ss:$0 sm:$0xff] }
  0x20   :  { %4287 = vmatpush3.bf16.msra.mxu0 %v4573_v16  ;;  %v4941_v45 = vld [vmem:[%s5572_s27] sm:$0x3]  ;;  %s5575_s27 = smov 112  }
  0x21   :  { %4307 = vmatprep.subr.mxu0 %v4734_v15  ;;  %v4946_v46 = vrot.slane %v4941_v45, %v271_v44 }
  0x9d   :  { %v80_v4 = vpop.xlane.xlu0 %79 }
  0x9e   :  { %v85_v5 = vmul.f32 0.03125, %v80_v4 }
  0xa0   :  { %v87_v6 = vsub.f32 %v73_v0, %v85_v5 }
  0xa1   :  { %v83_v7 = vpop.xlane.xlu0 %82 }
  0xa2   :  { %v86_v8 = vmul.f32 0.03125, %v83_v7  ;;  %v89_v9 = vmul.f32 %v87_v6, %v87_v6 }
  0xa4   :  { %v88_v10 = vsub.f32 %v74_v1, %v86_v8  ;;  %v91_v11 = vsel %vm77_vm0, %v89_v9, 0.0 }
  0xa5   :  { %92 = vadd.xlane.f32.xlu1 %v91_v11 }
  0xa6   :  { %v90_v12 = vmul.f32 %v88_v10, %v88_v10 }
  0xa8   :  { %v94_v13 = vsel %vm77_vm0, %v90_v12, 0.0 }
  0xa9   :  { %95 = vadd.xlane.f32.xlu1 %v94_v13 }
 0x132   :  { %v93_v17 = vpop.xlane.xlu1 %92 }
 0x133   :  { %v97_v18 = vmul.f32 0.03125, %v93_v17 }
 0x135   :  { %v99_v19 = vadd.f32 1e-12, %v97_v18 }
 0x136   :  { %v96_v20 = vpop.xlane.xlu1 %95 }
 0x137   :  { %4616 = vrsqrt.f32 %v99_v19  ;;  %v98_v21 = vmul.f32 0.03125, %v96_v20 }
 0x139   :  { %v100_v22 = vadd.f32 1e-12, %v98_v21 }
 0x13b   :  { %4618 = vrsqrt.f32 %v100_v22  ;;  %v959_v22 = vsub.s32 1, %v4935_v43 }
 0x141   :  { %v4617_v23 = vpop.eup %4616 }
 0x142   :  { %v103_v24 = vmul.f32 %v4617_v23, %v87_v6 }
 0x144   :  { %v111_v28 = vmul.f32 %v4019_v25, %v103_v24 }
 0x145   :  { %v4619_v26 = vpop.eup %4618 }
 0x146   :  { %v104_v27 = vmul.f32 %v4619_v26, %v88_v10  ;;  %v4897_v31 = vadd.f32 %v4020_v29, %v111_v28  ;;  %v5016_v28 = vrot.slane %v4941_v45, %v959_v22 }
 0x148   :  { %v112_v30 = vmul.f32 %v4019_v25, %v104_v27 }
 0x14a   :  { %v4899_v32 = vadd.f32 %v4020_v29, %v112_v30 }
 0x14c   :  { %v127_v33 = vpack.c.bf16 %v4899_v32, %v4897_v31 }
 0x14e   :  { %4289 = vmatmul.mubr.msk.bf16.vlgmr.msra.gmra.mrb[0].mxu0 %vm77_vm0, %v127_v33 }
 0x14f   :  { %4309 = vmatprep.mubr.msk.f32.mxu0 %vm4735_vm1, %v4734_v15 }
 0x221   :  { %v183_v35 = vpop.f32.mrb[0].mxu0 }
 0x222   :  { %v4909_v36 = vadd.f32 %v4021_v34, %v183_v35  ;;  %v4290_v37 = vpop.f32.mrb[1].mxu0 }
 0x223   :  { %v186_v38 = vpop.f32.mrb[2].mxu0 }
 0x224   :  { %191 = vrot.lane.b32.xlu0 %v4909_v36, %s4736_s4  ;;  %v4291_v39 = vpop.f32.mrb[3].mxu0  ;;  %v4919_v40 = vadd.f32 %v4021_v34, %v186_v38 }
 0x228   :  { %363 = vrot.lane.b32.xlu0 %v4909_v36, %s4737_s0 }
 0x22c   :  { %530 = vrot.lane.b32.xlu0 %v4909_v36, %s5558_s23 }
 0x230   :  { %697 = vrot.lane.b32.xlu0 %v4909_v36, %s4739_s5 }
 0x234   :  { %880 = vrot.lane.b32.xlu0 %v4919_v40, %s4736_s4 }
 0x238   :  { %1049 = vrot.lane.b32.xlu0 %v4919_v40, %s4740_s24 }
 0x23c   :  { %1216 = vrot.lane.b32.xlu0 %v4919_v40, %s5556_s6 }
 0x240   :  { %1383 = vrot.lane.b32.xlu0 %v4919_v40, %s5554_s25 }
 0x296   :  { %v192_v41 = vpop.permute.xlu0 %191 }
 0x297   :  { %4293 = vmatpush3.xpose.msk.msra.mxu1 %vm193_vm2, %v192_v41 }
 0x298   :  { %4297 = vmatprep.subr.mxu1 %v4734_v15 }
 0x29a   :  { %4295 = vmatmul.mubr.msk.f32.vlgmr.msra.gmra.mrb[0].mxu1 %vm193_vm2, %v4909_v36  ;;  %v364_v60 = vpop.permute.xlu0 %363 }
 0x29b   :  { %4299 = vmatprep.mubr.msk.f32.mxu1 %vm4735_vm1, %v4734_v15 }
 0x29e   :  { %v531_v62 = vpop.permute.xlu0 %530 }
 0x2a2   :  { %v698_v1 = vpop.permute.xlu0 %697 }
 0x2a6   :  { %v881_v3 = vpop.permute.xlu0 %880 }
 0x2aa   :  { %v1050_v5 = vpop.permute.xlu0 %1049 }
 0x2ae   :  { %v1217_v7 = vpop.permute.xlu0 %1216 }
 0x2b2   :  { %v1384_v9 = vpop.permute.xlu0 %1383 }
 0x36d   :  { %v264_v47 = vpop.f32.mrb[0].mxu1 }
 0x36e   :  { %v268_v48 = vmul.f32 0.35355338, %v264_v47  ;;  %v4296_v49 = vpop.f32.mrb[1].mxu1 }
 0x370   :  { %v273_v50 = vadd.f32 %v4946_v46, %v268_v48 }
 0x372   :  { %v274_v51 = vsel %vm193_vm2, %v273_v50, -inf }
 0x373   :  { %275 = vmax.xlane.f32.xlu1 %v274_v51 }
 0x384   :  { %285 = vrot.lane.b32.xlu1 %v4909_v36, %s5545_s3 }
 0x388   :  { %361 = vrot.lane.b32.xlu1 %v4909_v36, %s4740_s24 }
 0x400   :  { %v276_v52 = vpop.xlane.xlu1 %275 }
 0x401   :  { %v277_v53 = vsub.f32 %v273_v50, %v276_v52 }
 0x403   :  { %v278_v54 = vmul.f32 1.442695, %v277_v53 }
 0x404   :  { %v286_v55 = vpop.permute.xlu1 %285 }
 0x405   :  { %4620 = vpow2.f32 %v278_v54  ;;  %4298 = vmatpush3.msra.mxu1 %v286_v55 }
 0x406   :  { %4302 = vmatprep.subr.mxu1 %v4734_v15 }
 0x408   :  { %v362_v58 = vpop.permute.xlu1 %361 }
 0x40f   :  { %v4621_v56 = vpop.eup %4620 }
 0x410   :  { %v280_v57 = vsel %vm193_vm2, %v4621_v56, 0.0 }
 0x411   :  { %281 = vadd.xlane.f32.xlu1 %v280_v57 }
 0x422   :  { %528 = vrot.lane.b32.xlu1 %v4909_v36, %s5556_s6  ;;  %s5582_s6 = smov 16  }
 0x426   :  { %695 = vrot.lane.b32.xlu1 %v4909_v36, %s5554_s25 }
 0x42a   :  { %1051 = vrot.lane.b32.xlu1 %v4919_v40, %s4737_s0 }
 0x42e   :  { %1218 = vrot.lane.b32.xlu1 %v4919_v40, %s5558_s23  ;;  %s5581_s23 = smov 8  }
 0x432   :  { %1385 = vrot.lane.b32.xlu1 %v4919_v40, %s4739_s5 }
 0x49e   :  { %v282_v59 = vpop.xlane.xlu1 %281 }
 0x49f   :  { %4622 = vrcp.f32 %v282_v59 }
 0x4a2   :  { %v529_v0 = vpop.permute.xlu1 %528 }
 0x4a6   :  { %v696_v2 = vpop.permute.xlu1 %695 }
 0x4a9   :  { %v4623_v61 = vpop.eup %4622 }
 0x4aa   :  { %v284_v63 = vmul.f32 %v4623_v61, %v4621_v56  ;;  %v1052_v4 = vpop.permute.xlu1 %1051 }
 0x4ac   :  { %4300 = vmatmul.mubr.msk.f32.vlgmr.msra.gmra.mrb[2].mxu1 %vm193_vm2, %v284_v63 }
 0x4ad   :  { %4303 = vmatpush3.xpose.msk.msra.mxu1 %vm193_vm2, %v364_v60  ;;  %4304 = vmatprep.mubr.msk.f32.mxu1 %vm4735_vm1, %v4734_v15 }
 0x4ae   :  { %4312 = vmatprep.subr.mxu1 %v4734_v15  ;;  %v1219_v6 = vpop.permute.xlu1 %1218 }
 0x4b0   :  { %4305 = vmatmul.mubr.msk.f32.vlgmr.msra.gmra.mrb[4].mxu1 %vm193_vm2, %v362_v58 }
 0x4b1   :  { %4313 = vmatpush3.xpose.msk.msra.mxu1 %vm193_vm2, %v531_v62  ;;  %4314 = vmatprep.mubr.msk.f32.mxu1 %vm4735_vm1, %v4734_v15 }
 0x4b2   :  { %4322 = vmatprep.subr.mxu1 %v4734_v15  ;;  %v1386_v8 = vpop.permute.xlu1 %1385 }
 0x4b4   :  { %4315 = vmatmul.mubr.msk.f32.vlgmr.msra.gmra.mrb[6].mxu1 %vm193_vm2, %v529_v0 }
 0x4b5   :  { %4323 = vmatpush3.xpose.msk.msra.mxu1 %vm193_vm2, %v698_v1  ;;  %4324 = vmatprep.mubr.msk.f32.mxu1 %vm4735_vm1, %v4734_v15 }
 0x4b6   :  { %4332 = vmatprep.subr.mxu1 %v4734_v15 }
 0x4b8   :  { %4325 = vmatmul.mubr.msk.f32.vlgmr.msra.gmra.mrb[8].mxu1 %vm193_vm2, %v696_v2 }
 0x4b9   :  { %4333 = vmatpush3.xpose.msk.msra.mxu1 %vm193_vm2, %v881_v3  ;;  %4334 = vmatprep.mubr.msk.f32.mxu1 %vm4735_vm1, %v4734_v15 }
 0x4ba   :  { %4342 = vmatprep.subr.mxu1 %v4734_v15 }
 0x4bc   :  { %4335 = vmatmul.mubr.msk.f32.vlgmr.msra.gmra.mrb[10].mxu1 %vm193_vm2, %v4919_v40 }
 0x4bd   :  { %4343 = vmatpush3.xpose.msk.msra.mxu1 %vm193_vm2, %v1052_v4  ;;  %4344 = vmatprep.mubr.msk.f32.mxu1 %vm4735_vm1, %v4734_v15 }
 0x4be   :  { %4352 = vmatprep.subr.mxu1 %v4734_v15 }
 0x4c0   :  { %4345 = vmatmul.mubr.msk.f32.vlgmr.msra.gmra.mrb[12].mxu1 %vm193_vm2, %v1050_v5 }
 0x4c1   :  { %4353 = vmatpush3.xpose.msk.msra.mxu1 %vm193_vm2, %v1219_v6  ;;  %4354 = vmatprep.mubr.msk.f32.mxu1 %vm4735_vm1, %v4734_v15 }
 0x4c2   :  { %4362 = vmatprep.subr.mxu1 %v4734_v15 }
 0x4c4   :  { %4355 = vmatmul.mubr.msk.f32.vlgmr.msra.gmra.mrb[14].mxu1 %vm193_vm2, %v1217_v7 }
 0x4c5   :  { %4363 = vmatpush3.xpose.msk.msra.mxu1 %vm193_vm2, %v1386_v8  ;;  %4364 = vmatprep.mubr.msk.f32.mxu1 %vm4735_vm1, %v4734_v15 }
 0x4c6   :  { %4372 = vmatprep.subr.bf16.mxu1 %v4734_v15 }
 0x4c8   :  { %4365 = vmatmul.mubr.msk.f32.vlgmr.msra.gmra.mrb[16].mxu1 %vm193_vm2, %v1384_v9 }
 0x4c9   :  { %4376 = vmatprep.mubr.msk.bf16.mxu1 %vm4735_vm1, %v4734_v15 }
 0x57f   :  { %v5005_v10 = vpop.f32.mrb[2].mxu1 }
 0x580   :  { %v4301_v11 = vpop.f32.mrb[3].mxu1 }
 0x583   :  { %v435_v12 = vpop.f32.mrb[4].mxu1 }
 0x584   :  { %v439_v13 = vmul.f32 0.35355338, %v435_v12  ;;  %v4306_v14 = vpop.f32.mrb[5].mxu1 }
 0x586   :  { %v440_v16 = vadd.f32 %v439_v13, %v4946_v46 }
 0x587   :  { %v602_v17 = vpop.f32.mrb[6].mxu1 }
 0x588   :  { %v606_v18 = vmul.f32 0.35355338, %v602_v17  ;;  %v4316_v19 = vpop.f32.mrb[7].mxu1  ;;  %v441_v20 = vsel %vm193_vm2, %v440_v16, -inf }
 0x589   :  { %442 = vmax.xlane.f32.xlu1 %v441_v20 }
 0x58a   :  { %v607_v21 = vadd.f32 %v606_v18, %v4946_v46 }
 0x58b   :  { %v769_v23 = vpop.f32.mrb[8].mxu1 }
 0x58c   :  { %v773_v24 = vmul.f32 0.35355338, %v769_v23  ;;  %v4326_v25 = vpop.f32.mrb[9].mxu1  ;;  %v608_v26 = vsel %vm193_vm2, %v607_v21, -inf }
 0x58d   :  { %609 = vmax.xlane.f32.xlu0 %v608_v26 }
 0x58e   :  { %v774_v27 = vadd.f32 %v773_v24, %v4946_v46 }
 0x58f   :  { %v952_v29 = vpop.f32.mrb[10].mxu1 }
 0x590   :  { %v956_v30 = vmul.f32 0.35355338, %v952_v29  ;;  %v4336_v33 = vpop.f32.mrb[11].mxu1  ;;  %v775_v34 = vsel %vm193_vm2, %v774_v27, -inf }
 0x591   :  { %776 = vmax.xlane.f32.xlu0 %v775_v34 }
 0x592   :  { %v961_v35 = vadd.f32 %v5016_v28, %v956_v30 }
 0x593   :  { %v1123_v37 = vpop.f32.mrb[12].mxu1 }
 0x594   :  { %v1127_v38 = vmul.f32 0.35355338, %v1123_v37  ;;  %v4346_v39 = vpop.f32.mrb[13].mxu1  ;;  %v962_v41 = vsel %vm193_vm2, %v961_v35, -inf }
 0x595   :  { %963 = vmax.xlane.f32.xlu0 %v962_v41 }
 0x596   :  { %v1128_v42 = vadd.f32 %v1127_v38, %v5016_v28 }
 0x597   :  { %v1290_v47 = vpop.f32.mrb[14].mxu1 }
 0x598   :  { %v1294_v48 = vmul.f32 0.35355338, %v1290_v47  ;;  %v4356_v45 = vpop.f32.mrb[15].mxu1  ;;  %v1129_v49 = vsel %vm193_vm2, %v1128_v42, -inf }
 0x599   :  { %1130 = vmax.xlane.f32.xlu1 %v1129_v49 }
 0x59a   :  { %v1295_v50 = vadd.f32 %v1294_v48, %v5016_v28 }
 0x59b   :  { %v1457_v51 = vpop.f32.mrb[16].mxu1 }
 0x59c   :  { %v4366_v52 = vpop.f32.mrb[17].mxu1  ;;  %v1296_v53 = vsel %vm193_vm2, %v1295_v50, -inf  ;;  %v1461_v54 = vmul.f32 0.35355338, %v1457_v51 }
 0x59d   :  { %1297 = vmax.xlane.f32.xlu0 %v1296_v53 }
 0x59e   :  { %v1462_v55 = vadd.f32 %v1461_v54, %v5016_v28 }
 0x5a0   :  { %v1463_v56 = vsel %vm193_vm2, %v1462_v55, -inf }
 0x5aa   :  { %452 = vrot.lane.b32.xlu1 %v4909_v36, %s5549_s28 }
 0x5ce   :  { %1464 = vmax.xlane.f32.xlu1 %v1463_v56 }
 0x5df   :  { %786 = vrot.lane.b32.xlu1 %v4909_v36, %s5543_s29 }
 0x5e3   :  { %973 = vrot.lane.b32.xlu1 %v4919_v40, %s5545_s3  ;;  %s5551_s3 = smov 24  }
 0x616   :  { %v443_v57 = vpop.xlane.xlu1 %442 }
 0x617   :  { %v444_v58 = vsub.f32 %v440_v16, %v443_v57 }
 0x619   :  { %v445_v59 = vmul.f32 1.442695, %v444_v58 }
 0x61a   :  { %v610_v60 = vpop.xlane.xlu0 %609 }
 0x61b   :  { %4624 = vpow2.f32 %v445_v59  ;;  %v611_v61 = vsub.f32 %v607_v21, %v610_v60 }
 0x61d   :  { %v612_v62 = vmul.f32 1.442695, %v611_v61 }
 0x61e   :  { %v777_v5 = vpop.xlane.xlu0 %776 }
 0x61f   :  { %4626 = vpow2.f32 %v612_v62  ;;  %v778_v6 = vsub.f32 %v774_v27, %v777_v5 }
 0x621   :  { %v779_v9 = vmul.f32 1.442695, %v778_v6 }
 0x622   :  { %v964_v7 = vpop.xlane.xlu0 %963 }
 0x623   :  { %v965_v8 = vsub.f32 %v961_v35, %v964_v7  ;;  %4628 = vpow2.f32 %v779_v9 }
 0x625   :  { %v4625_v63 = vpop.eup %4624  ;;  %v966_v13 = vmul.f32 1.442695, %v965_v8 }
 0x626   :  { %v1131_v0 = vpop.xlane.xlu1 %1130  ;;  %v447_v1 = vsel %vm193_vm2, %v4625_v63, 0.0 }
 0x627   :  { %448 = vadd.xlane.f32.xlu0 %v447_v1  ;;  %v1132_v11 = vsub.f32 %v1128_v42, %v1131_v0  ;;  %4630 = vpow2.f32 %v966_v13 }
 0x629   :  { %v4627_v2 = vpop.eup %4626  ;;  %v1133_v14 = vmul.f32 1.442695, %v1132_v11 }
 0x62a   :  { %v453_v3 = vpop.permute.xlu1 %452  ;;  %v614_v4 = vsel %vm193_vm2, %v4627_v2, 0.0  ;;  %v1298_v12 = vpop.xlane.xlu0 %1297 }
 0x62b   :  { %4308 = vmatpush3.msra.mxu0 %v453_v3  ;;  %615 = vadd.xlane.f32.xlu1 %v614_v4  ;;  %v1299_v16 = vsub.f32 %v1295_v50, %v1298_v12  ;;  %4632 = vpow2.f32 %v1133_v14 }
 0x62c   :  { %4317 = vmatprep.subr.mxu0 %v4734_v15 }
 0x62d   :  { %v1300_v17 = vmul.f32 1.442695, %v1299_v16  ;;  %v4629_v18 = vpop.eup %4628 }
 0x62f   :  { %4634 = vpow2.f32 %v1300_v17 }
 0x631   :  { %v4631_v19 = vpop.eup %4630 }
 0x632   :  { %v968_v26 = vsel %vm193_vm2, %v4631_v19, 0.0 }
 0x635   :  { %v4633_v21 = vpop.eup %4632 }
 0x636   :  { %v1135_v25 = vsel %vm193_vm2, %v4633_v21, 0.0 }
 0x639   :  { %v4635_v27 = vpop.eup %4634 }
 0x63a   :  { %v1302_v29 = vsel %vm193_vm2, %v4635_v27, 0.0 }
 0x63c   :  { %1140 = vrot.lane.b32.xlu1 %v4919_v40, %s5549_s28  ;;  %s5553_s28 = smov 8  }
 0x63d   :  { %619 = vrot.lane.b32.xlu0 %v4909_v36, %s5547_s26  ;;  %v781_v36 = vsel %vm193_vm2, %v4629_v18, 0.0 }
 0x65b   :  { %v1465_v20 = vpop.xlane.xlu1 %1464 }
 0x65c   :  { %v1466_v23 = vsub.f32 %v1462_v55, %v1465_v20  ;;  %782 = vadd.xlane.f32.xlu0 %v781_v36 }
 0x65e   :  { %v1467_v24 = vmul.f32 1.442695, %v1466_v23 }
 0x65f   :  { %v787_v34 = vpop.permute.xlu1 %786 }
 0x660   :  { %4636 = vpow2.f32 %v1467_v24  ;;  %1136 = vadd.xlane.f32.xlu0 %v1135_v25  ;;  %969 = vadd.xlane.f32.xlu1 %v968_v26 }
 0x663   :  { %v974_v35 = vpop.permute.xlu1 %973 }
 0x664   :  { %1303 = vadd.xlane.f32.xlu1 %v1302_v29 }
 0x66a   :  { %v4637_v30 = vpop.eup %4636 }
 0x66b   :  { %v1469_v33 = vsel %vm193_vm2, %v4637_v30, 0.0 }
 0x66c   :  { %1470 = vadd.xlane.f32.xlu0 %v1469_v33 }
 0x675   :  { %1474 = vrot.lane.b32.xlu1 %v4919_v40, %s5543_s29  ;;  %s5573_s29 = sld [smem:[#allocation11_spill]] }
 0x67b   :  { %v4574_v7 = vld [vmem:[%s5573_s29] sm:$0xff]   ;;  %v4575_v11 = vld [vmem:[%s5573_s29 + $0x8] sm:$0xff]  }
 0x67c   :  { %4373 = vmatpush3.bf16.msra.mxu1 %v4574_v7 }
 0x67d   :  { %4374 = vmatprep.subr.bf16.mxu1 %v4734_v15 }
 0x680   :  { %4375 = vmatpush3.bf16.msra.mxu1 %v4575_v11 }
 0x681   :  { %4418 = vmatprep.subr.mxu1 %v4734_v15 }
 0x682   :  { %1307 = vrot.lane.b32.xlu0 %v4919_v40, %s5547_s26  ;;  %s5583_s26 = smov 24  }
 0x6b4   :  { %v449_v37 = vpop.xlane.xlu0 %448 }
 0x6b5   :  { %4638 = vrcp.f32 %v449_v37 }
 0x6b8   :  { %v616_v38 = vpop.xlane.xlu1 %615  ;;  %v620_v42 = vpop.permute.xlu0 %619 }
 0x6b9   :  { %4640 = vrcp.f32 %v616_v38 }
 0x6bc   :  { %v1141_v40 = vpop.permute.xlu1 %1140 }
 0x6bf   :  { %v4639_v39 = vpop.eup %4638 }
 0x6c0   :  { %v451_v41 = vmul.f32 %v4639_v39, %v4625_v63 }
 0x6c2   :  { %4310 = vmatmul.mubr.msk.f32.vlgmr.msra.gmra.mrb[4].mxu0 %vm193_vm2, %v451_v41 }
 0x6c3   :  { %v4641_v47 = vpop.eup %4640  ;;  %4318 = vmatpush3.msra.mxu0 %v620_v42  ;;  %4319 = vmatprep.mubr.msk.f32.mxu0 %vm4735_vm1, %v4734_v15 }
 0x6c4   :  { %v618_v48 = vmul.f32 %v4641_v47, %v4627_v2  ;;  %4327 = vmatprep.subr.mxu0 %v4734_v15 }
 0x6c6   :  { %4320 = vmatmul.mubr.msk.f32.vlgmr.msra.gmra.mrb[6].mxu0 %vm193_vm2, %v618_v48 }
 0x6c7   :  { %4328 = vmatpush3.msra.mxu0 %v787_v34  ;;  %4329 = vmatprep.mubr.msk.f32.mxu0 %vm4735_vm1, %v4734_v15 }
 0x6c8   :  { %4337 = vmatprep.subr.mxu0 %v4734_v15 }
 0x6e9   :  { %v783_v45 = vpop.xlane.xlu0 %782 }
 0x6ea   :  { %4642 = vrcp.f32 %v783_v45 }
 0x6ed   :  { %v970_v49 = vpop.xlane.xlu1 %969  ;;  %v1137_v50 = vpop.xlane.xlu0 %1136 }
 0x6ee   :  { %4644 = vrcp.f32 %v970_v49 }
 0x6ef   :  { %4646 = vrcp.f32 %v1137_v50 }
 0x6f1   :  { %v1304_v51 = vpop.xlane.xlu1 %1303 }
 0x6f2   :  { %4648 = vrcp.f32 %v1304_v51 }
 0x6f4   :  { %v4643_v52 = vpop.eup %4642 }
 0x6f5   :  { %v785_v53 = vmul.f32 %v4643_v52, %v4629_v18  ;;  %v1475_v62 = vpop.permute.xlu1 %1474 }
 0x6f7   :  { %4330 = vmatmul.mubr.msk.f32.vlgmr.msra.gmra.mrb[8].mxu0 %vm193_vm2, %v785_v53 }
 0x6f8   :  { %v4645_v54 = vpop.eup %4644  ;;  %4338 = vmatpush3.msra.mxu0 %v974_v35  ;;  %4339 = vmatprep.mubr.msk.f32.mxu0 %vm4735_vm1, %v4734_v15 }
 0x6f9   :  { %v972_v55 = vmul.f32 %v4645_v54, %v4631_v19  ;;  %v1471_v56 = vpop.xlane.xlu0 %1470  ;;  %4347 = vmatprep.subr.mxu0 %v4734_v15  ;;  %v4647_v57 = vpop.eup %4646 }
 0x6fa   :  { %4650 = vrcp.f32 %v1471_v56  ;;  %v1139_v58 = vmul.f32 %v4647_v57, %v4633_v21 }
 0x6fb   :  { %4340 = vmatmul.mubr.msk.f32.vlgmr.msra.gmra.mrb[10].mxu0 %vm193_vm2, %v972_v55 }
 0x6fc   :  { %4348 = vmatpush3.msra.mxu0 %v1141_v40  ;;  %4349 = vmatprep.mubr.msk.f32.mxu0 %vm4735_vm1, %v4734_v15  ;;  %v4649_v60 = vpop.eup %4648 }
 0x6fd   :  { %v1308_v59 = vpop.permute.xlu0 %1307  ;;  %4357 = vmatprep.subr.mxu0 %v4734_v15  ;;  %v1306_v61 = vmul.f32 %v4649_v60, %v4635_v27 }
 0x6ff   :  { %4350 = vmatmul.mubr.msk.f32.vlgmr.msra.gmra.mrb[12].mxu0 %vm193_vm2, %v1139_v58 }
 0x700   :  { %4358 = vmatpush3.msra.mxu0 %v1308_v59  ;;  %4359 = vmatprep.mubr.msk.f32.mxu0 %vm4735_vm1, %v4734_v15 }
 0x701   :  { %4367 = vmatprep.subr.mxu0 %v4734_v15 }
 0x703   :  { %4360 = vmatmul.mubr.msk.f32.vlgmr.msra.gmra.mrb[14].mxu0 %vm193_vm2, %v1306_v61 }
 0x704   :  { %v4651_v63 = vpop.eup %4650  ;;  %4368 = vmatpush3.msra.mxu0 %v1475_v62  ;;  %4369 = vmatprep.mubr.msk.f32.mxu0 %vm4735_vm1, %v4734_v15 }
 0x705   :  { %v1473_v0 = vmul.f32 %v4651_v63, %v4637_v30  ;;  %4380 = vmatprep.subr.bf16.mxu0 %v4734_v15 }
 0x707   :  { %4370 = vmatmul.mubr.msk.f32.vlgmr.msra.gmra.mrb[16].mxu0 %vm193_vm2, %v1473_v0  ;;  %v4577_v0 = vld [vmem:[%s5526_s10 + $0x8] sm:$0xff]  }
 0x708   :  { %4384 = vmatprep.mubr.msk.bf16.mxu0 %vm4735_vm1, %v4734_v15 }
 0x795   :  { %v524_v1 = vpop.f32.mrb[4].mxu0 }
 0x796   :  { %v4311_v2 = vpop.f32.mrb[5].mxu0 }
 0x799   :  { %v691_v3 = vpop.f32.mrb[6].mxu0 }
 0x79a   :  { %v4321_v4 = vpop.f32.mrb[7].mxu0 }
 0x7ca   :  { %v858_v5 = vpop.f32.mrb[8].mxu0 }
 0x7cb   :  { %v4331_v6 = vpop.f32.mrb[9].mxu0 }
 0x7ce   :  { %v1045_v8 = vpop.f32.mrb[10].mxu0 }
 0x7cf   :  { %v4341_v9 = vpop.f32.mrb[11].mxu0 }
 0x7d0   :  { %v4053_v9 = vld [vmem:[%s5524_s8] ss:$0 sm:$0xff] }
 0x7d2   :  { %v1212_v12 = vpop.f32.mrb[12].mxu0 }
 0x7d3   :  { %v4542_v13 = vpack.i.bf16 %v1212_v12, %v524_v1  ;;  %v4351_v14 = vpop.f32.mrb[13].mxu0 }
 0x7d4   :  { %v4054_v14 = vld [vmem:[%s5525_s9] ss:$0 sm:$0xff] }
 0x7d5   :  { %4543 = vrot.lane.b32.xlu0 %v4542_v13, %s5553_s28 }
 0x7d6   :  { %v1379_v16 = vpop.f32.mrb[14].mxu0 }
 0x7d7   :  { %v4547_v17 = vpack.i.bf16 %v1379_v16, %v691_v3  ;;  %v4361_v18 = vpop.f32.mrb[15].mxu0 }
 0x7d9   :  { %4548 = vrot.lane.b32.xlu1 %v4547_v17, %s5552_s2  ;;  %s5576_s2 = smov 104  }
 0x7da   :  { %v1546_v19 = vpop.f32.mrb[16].mxu0 }
 0x7db   :  { %v4552_v20 = vpack.i.bf16 %v1546_v19, %v858_v5  ;;  %v4371_v36 = vpop.f32.mrb[17].mxu0 }
 0x7dc   :  { %v4579_v36 = vld [vmem:[%s5528_s12 + $0x8] sm:$0xff]  }
 0x7dd   :  { %4553 = vrot.lane.b32.xlu0 %v4552_v20, %s5551_s3  ;;  %v4578_v20 = vld [vmem:[%s5528_s12] sm:$0xff]  }
 0x847   :  { %v4544_v21 = vpop.permute.xlu0 %4543 }
 0x848   :  { %v4546_v24 = vunpack.i.h.bf16 %v4544_v21  ;;  %v4545_v25 = vunpack.i.l.bf16 %v4544_v21  ;;  %v4580_v21 = vld [vmem:[%s5528_s12 + $0x10] sm:$0xff]  }
 0x84a   :  { %v1562_v30 = vsel %vm193_vm2, %v1045_v8, %v4546_v24  ;;  %v874_v33 = vsel %vm193_vm2, %v5005_v10, %v4545_v25  ;;  %v4049_v10 = vld [vmem:[%s5523_s7] ss:$0 sm:$0xff] }
 0x84b   :  { %v4549_v23 = vpop.permute.xlu1 %4548  ;;  %v4055_v24 = vld [vmem:[%s5527_s11] ss:$0 sm:$0xff] }
 0x84c   :  { %v4551_v26 = vunpack.i.h.bf16 %v4549_v23  ;;  %v4550_v27 = vunpack.i.l.bf16 %v4549_v23  ;;  %v4581_v23 = vld [vmem:[%s5528_s12 + $0x18] sm:$0xff]  }
 0x84e   :  { %v1563_v37 = vsel %vm875_vm3, %v1562_v30, %v4551_v26  ;;  %v876_v38 = vsel %vm875_vm3, %v874_v33, %v4550_v27 }
 0x84f   :  { %v4554_v29 = vpop.permute.xlu0 %4553 }
 0x850   :  { %v4556_v34 = vunpack.i.h.bf16 %v4554_v29  ;;  %v4555_v35 = vunpack.i.l.bf16 %v4554_v29 }
 0x852   :  { %v1564_v39 = vsel %vm877_vm4, %v1563_v37, %v4556_v34  ;;  %v878_v41 = vsel %vm877_vm4, %v876_v38, %v4555_v35 }
 0x853   :  { %v1570_v42 = vpack.c.bf16 %v1564_v39, %v878_v41 }
 0x855   :  { %4377 = vmatmul.mubr.msk.bf16.vlgmr.msra.gmra.mrb[20].mxu1 %vm77_vm0, %v1570_v42 }
 0x856   :  { %4420 = vmatprep.mubr.msk.f32.mxu1 %vm4735_vm1, %v4734_v15 }
 0x928   :  { %v1626_v47 = vpop.f32.mrb[20].mxu1 }
 0x929   :  { %v1627_v48 = vadd.f32 %v4049_v10, %v1626_v47  ;;  %v4378_v40 = vpop.f32.mrb[21].mxu1 }
 0x92a   :  { %v1629_v45 = vpop.f32.mrb[22].mxu1 }
 0x92b   :  { %v1630_v49 = vadd.f32 %v4049_v10, %v1629_v45  ;;  %v4379_v50 = vpop.f32.mrb[23].mxu1  ;;  %v1633_v51 = vadd.f32 %v1627_v48, %v4897_v31 }
 0x92d   :  { %v1637_v52 = vsel %vm77_vm0, %v1633_v51, 0.0  ;;  %v1634_v53 = vadd.f32 %v1630_v49, %v4899_v32  ;;  %v4576_v32 = vld [vmem:[%s5526_s10] sm:$0xff]  }
 0x92e   :  { %1638 = vadd.xlane.f32.xlu1 %v1637_v52  ;;  %4381 = vmatpush3.bf16.msra.mxu0 %v4576_v32 }
 0x92f   :  { %v1640_v54 = vsel %vm77_vm0, %v1634_v53, 0.0  ;;  %4382 = vmatprep.subr.bf16.mxu0 %v4734_v15 }
 0x930   :  { %1641 = vadd.xlane.f32.xlu0 %v1640_v54 }
 0x932   :  { %4383 = vmatpush3.bf16.msra.mxu0 %v4577_v0 }
 0x933   :  { %4388 = vmatprep.subr.bf16.mxu0 %v4734_v15 }
 0x9bb   :  { %v1639_v55 = vpop.xlane.xlu1 %1638 }
 0x9bc   :  { %v1643_v56 = vmul.f32 0.03125, %v1639_v55 }
 0x9bd   :  { %v1642_v57 = vpop.xlane.xlu0 %1641 }
 0x9be   :  { %v1645_v58 = vsub.f32 %v1633_v51, %v1643_v56  ;;  %v1644_v59 = vmul.f32 0.03125, %v1642_v57  ;;  %v4059_v56 = vld [vmem:[%s5529_s13] ss:$0 sm:$0xff] }
 0x9c0   :  { %v1646_v60 = vsub.f32 %v1634_v53, %v1644_v59  ;;  %v1647_v61 = vmul.f32 %v1645_v58, %v1645_v58 }
 0x9c2   :  { %v1649_v62 = vsel %vm77_vm0, %v1647_v61, 0.0  ;;  %v1648_v63 = vmul.f32 %v1646_v60, %v1646_v60 }
 0x9c3   :  { %1650 = vadd.xlane.f32.xlu0 %v1649_v62 }
 0x9c4   :  { %v1652_v31 = vsel %vm77_vm0, %v1648_v63, 0.0 }
 0x9c7   :  { %1653 = vadd.xlane.f32.xlu0 %v1652_v31 }
 0xa50   :  { %v1651_v1 = vpop.xlane.xlu0 %1650 }
 0xa51   :  { %v1655_v2 = vmul.f32 0.03125, %v1651_v1 }
 0xa53   :  { %v1657_v3 = vadd.f32 1e-12, %v1655_v2 }
 0xa54   :  { %v1654_v4 = vpop.xlane.xlu0 %1653 }
 0xa55   :  { %4652 = vrsqrt.f32 %v1657_v3  ;;  %v1656_v5 = vmul.f32 0.03125, %v1654_v4 }
 0xa57   :  { %v1658_v6 = vadd.f32 1e-12, %v1656_v5 }
 0xa59   :  { %4654 = vrsqrt.f32 %v1658_v6 }
 0xa5f   :  { %v4653_v7 = vpop.eup %4652 }
 0xa60   :  { %v1661_v8 = vmul.f32 %v4653_v7, %v1645_v58 }
 0xa62   :  { %v1669_v12 = vmul.f32 %v4053_v9, %v1661_v8 }
 0xa63   :  { %v4655_v11 = vpop.eup %4654 }
 0xa64   :  { %v1662_v13 = vmul.f32 %v4655_v11, %v1646_v60  ;;  %v1677_v17 = vadd.f32 %v4054_v14, %v1669_v12  ;;  %v4582_v12 = vld [vmem:[%s5568_s1 + $0x10] sm:$0xff]  }
 0xa66   :  { %v1670_v16 = vmul.f32 %v4053_v9, %v1662_v13  ;;  %v4583_v13 = vld [vmem:[%s5568_s1 + $0x18] sm:$0xff]  }
 0xa68   :  { %v1678_v18 = vadd.f32 %v4054_v14, %v1670_v16 }
 0xa6a   :  { %v1684_v19 = vpack.c.bf16 %v1678_v18, %v1677_v17 }
 0xa6c   :  { %4385 = vmatmul.mubr.msk.bf16.vlgmr.msra.gmra.mrb[20].mxu0 %vm77_vm0, %v1684_v19 }
 0xa6d   :  { %4396 = vmatprep.mubr.msk.bf16.mxu0 %vm4735_vm1, %v4734_v15  ;;  %4389 = vmatpush3.bf16.msra.mxu0 %v4578_v20 }
 0xa6e   :  { %4390 = vmatprep.subr.bf16.mxu0 %v4734_v15 }
 0xa71   :  { %4391 = vmatpush3.bf16.msra.mxu0 %v4579_v36 }
 0xa72   :  { %4392 = vmatprep.subr.bf16.mxu0 %v4734_v15 }
 0xa75   :  { %4393 = vmatpush3.bf16.msra.mxu0 %v4580_v21  ;;  %v4065_v21 = vld [vmem:[%s5530_s14] ss:$0 sm:$0xff] }
 0xa76   :  { %4394 = vmatprep.subr.bf16.mxu0 %v4734_v15 }
 0xa79   :  { %4395 = vmatpush3.bf16.msra.mxu0 %v4581_v23 }
 0xa7a   :  { %4400 = vmatprep.subr.bf16.mxu0 %v4734_v15 }
 0xb3f   :  { %v1740_v25 = vpop.f32.mrb[20].mxu0 }
 0xb40   :  { %v1741_v26 = vadd.f32 %v4055_v24, %v1740_v25  ;;  %v4386_v27 = vpop.f32.mrb[21].mxu0 }
 0xb41   :  { %v1743_v29 = vpop.f32.mrb[22].mxu0  ;;  %v4066_v27 = vld [vmem:[%s5531_s15] ss:$0 sm:$0xff] }
 0xb42   :  { %v1749_v30 = vmul.f32 0.044715, %v1741_v26  ;;  %v1744_v33 = vadd.f32 %v4055_v24, %v1743_v29  ;;  %v4387_v34 = vpop.f32.mrb[23].mxu0  ;;  %v1747_v50 = vmul.f32 0.5, %v1741_v26 }
 0xb44   :  { %v1751_v35 = vmul.f32 %v1749_v30, %v1741_v26  ;;  %v1750_v37 = vmul.f32 0.044715, %v1744_v33  ;;  %v1748_v51 = vmul.f32 0.5, %v1744_v33 }
 0xb46   :  { %v1753_v38 = vmul.f32 %v1751_v35, %v1741_v26  ;;  %v1752_v39 = vmul.f32 %v1750_v37, %v1744_v33  ;;  %v4072_v35 = vld [vmem:[%s5571_s30 + $0x1] ss:$0 sm:$0xff]  ;;  %s5574_s30 = smov 80  }
 0xb48   :  { %v1755_v41 = vadd.f32 %v1753_v38, %v1741_v26  ;;  %v1754_v42 = vmul.f32 %v1752_v39, %v1744_v33 }
 0xb4a   :  { %v1757_v10 = vmul.f32 0.7978846, %v1755_v41  ;;  %v1756_v47 = vadd.f32 %v1754_v42, %v1744_v33 }
 0xb4c   :  { %4656 = vtanh.f32 %v1757_v10  ;;  %v1758_v48 = vmul.f32 0.7978846, %v1756_v47 }
 0xb4e   :  { %4658 = vtanh.f32 %v1758_v48 }
 0xb56   :  { %v4657_v40 = vpop.eup %4656 }
 0xb57   :  { %v1761_v45 = vadd.f32 1.0, %v4657_v40 }
 0xb58   :  { %v4659_v49 = vpop.eup %4658 }
 0xb59   :  { %v1762_v52 = vadd.f32 1.0, %v4659_v49  ;;  %v1763_v53 = vmul.f32 %v1761_v45, %v1747_v50 }
 0xb5b   :  { %v1764_v54 = vmul.f32 %v1762_v52, %v1748_v51 }
 0xb5d   :  { %v1774_v55 = vpack.c.bf16 %v1764_v54, %v1763_v53 }
 0xb5f   :  { %4397 = vmatmul.mubr.msk.bf16.vlgmr.msra.gmra.mrb[24].mxu0 %vm1805_vm5, %v1774_v55 }
 0xb60   :  { %4404 = vmatprep.mubr.msk.bf16.mxu0 %vm4735_vm1, %v4734_v15  ;;  %4401 = vmatpush3.bf16.msra.mxu0 %v4582_v12 }
 0xb61   :  { %4402 = vmatprep.subr.bf16.mxu0 %v4734_v15 }
 0xb64   :  { %4403 = vmatpush3.bf16.msra.mxu0 %v4583_v13 }
 0xb65   :  { %4408 = vmatprep.subr.mxu0 %v4734_v15 }
 0xc32   :  { %v1843_v57 = vpop.f32.mrb[24].mxu0 }
 0xc33   :  { %v1844_v58 = vadd.f32 %v4059_v56, %v1843_v57  ;;  %v4398_v59 = vpop.f32.mrb[25].mxu0 }
 0xc34   :  { %v1846_v60 = vpop.f32.mrb[26].mxu0 }
 0xc35   :  { %v1847_v61 = vadd.f32 %v4059_v56, %v1846_v60  ;;  %v4399_v62 = vpop.f32.mrb[27].mxu0  ;;  %v1850_v63 = vadd.f32 %v1844_v58, %v1677_v17 }
 0xc37   :  { %v1854_v31 = vsel %vm77_vm0, %v1850_v63, 0.0  ;;  %v1851_v32 = vadd.f32 %v1847_v61, %v1678_v18 }
 0xc38   :  { %1855 = vadd.xlane.f32.xlu1 %v1854_v31 }
 0xc39   :  { %v1857_v0 = vsel %vm77_vm0, %v1851_v32, 0.0 }
 0xc3a   :  { %1858 = vadd.xlane.f32.xlu0 %v1857_v0 }
 0xcc5   :  { %v1856_v1 = vpop.xlane.xlu1 %1855 }
 0xcc6   :  { %v1860_v2 = vmul.f32 0.03125, %v1856_v1 }
 0xcc7   :  { %v1859_v3 = vpop.xlane.xlu0 %1858 }
 0xcc8   :  { %v1862_v4 = vsub.f32 %v1850_v63, %v1860_v2  ;;  %v1861_v5 = vmul.f32 0.03125, %v1859_v3 }
 0xcca   :  { %v1863_v6 = vsub.f32 %v1851_v32, %v1861_v5  ;;  %v1864_v7 = vmul.f32 %v1862_v4, %v1862_v4 }
 0xccc   :  { %v1866_v8 = vsel %vm77_vm0, %v1864_v7, 0.0  ;;  %v1865_v9 = vmul.f32 %v1863_v6, %v1863_v6 }
 0xccd   :  { %1867 = vadd.xlane.f32.xlu1 %v1866_v8 }
 0xcce   :  { %v1869_v11 = vsel %vm77_vm0, %v1865_v9, 0.0 }
 0xccf   :  { %1870 = vadd.xlane.f32.xlu0 %v1869_v11 }
 0xd5a   :  { %v1868_v14 = vpop.xlane.xlu1 %1867 }
 0xd5b   :  { %v1872_v16 = vmul.f32 0.03125, %v1868_v14 }
 0xd5c   :  { %v1871_v17 = vpop.xlane.xlu0 %1870 }
 0xd5d   :  { %v1874_v18 = vadd.f32 1e-12, %v1872_v16  ;;  %v1873_v19 = vmul.f32 0.03125, %v1871_v17 }
 0xd5f   :  { %4660 = vrsqrt.f32 %v1874_v18  ;;  %v1875_v20 = vadd.f32 1e-12, %v1873_v19 }
 0xd61   :  { %4662 = vrsqrt.f32 %v1875_v20 }
 0xd69   :  { %v4661_v36 = vpop.eup %4660 }
 0xd6a   :  { %v1878_v23 = vmul.f32 %v4661_v36, %v1862_v4 }
 0xd6b   :  { %v4663_v24 = vpop.eup %4662 }
 0xd6c   :  { %v1886_v25 = vmul.f32 %v4065_v21, %v1878_v23  ;;  %v1879_v26 = vmul.f32 %v4663_v24, %v1863_v6 }
 0xd6e   :  { %v1887_v29 = vmul.f32 %v4065_v21, %v1879_v26  ;;  %v5166_v30 = vadd.f32 %v4066_v27, %v1886_v25 }
 0xd70   :  { %v5168_v33 = vadd.f32 %v4066_v27, %v1887_v29 }
 0xd72   :  { %v1903_v34 = vpack.c.bf16 %v5168_v33, %v5166_v30 }
 0xd74   :  { %4405 = vmatmul.mubr.msk.bf16.vlgmr.msra.gmra.mrb[28].mxu0 %vm77_vm0, %v1903_v34 }
 0xd75   :  { %4410 = vmatprep.mubr.msk.f32.mxu0 %vm4735_vm1, %v4734_v15 }
 0xe47   :  { %v1959_v37 = vpop.f32.mrb[28].mxu0 }
 0xe48   :  { %v5178_v38 = vadd.f32 %v4072_v35, %v1959_v37  ;;  %v4406_v39 = vpop.f32.mrb[29].mxu0 }
 0xe49   :  { %v1962_v41 = vpop.f32.mrb[30].mxu0 }
 0xe4a   :  { %2134 = vrot.lane.b32.xlu0 %v5178_v38, %s4737_s0  ;;  %1967 = vrot.lane.b32.xlu1 %v5178_v38, %s4736_s4  ;;  %v4407_v42 = vpop.f32.mrb[31].mxu0  ;;  %v5188_v10 = vadd.f32 %v4072_v35, %v1962_v41 }
 0xe4e   :  { %2468 = vrot.lane.b32.xlu0 %v5178_v38, %s4739_s5  ;;  %2132 = vrot.lane.b32.xlu1 %v5178_v38, %s4740_s24 }
 0xe52   :  { %2301 = vrot.lane.b32.xlu1 %v5178_v38, %s5574_s30  ;;  %2649 = vrot.lane.b32.xlu0 %v5188_v10, %s4736_s4  ;;  %s5577_s4 = smov 56  }
 0xe56   :  { %2299 = vrot.lane.b32.xlu1 %v5178_v38, %s5575_s27  ;;  %2814 = vrot.lane.b32.xlu0 %v5188_v10, %s4740_s24  ;;  %s5580_s24 = smov 40  }
 0xe5a   :  { %2466 = vrot.lane.b32.xlu1 %v5178_v38, %s5576_s2  ;;  %2981 = vrot.lane.b32.xlu0 %v5188_v10, %s5575_s27 }
 0xe5e   :  { %2816 = vrot.lane.b32.xlu1 %v5188_v10, %s4737_s0  ;;  %3148 = vrot.lane.b32.xlu0 %v5188_v10, %s5576_s2  ;;  %s5578_s0 = smov 48  }
 0xe62   :  { %2983 = vrot.lane.b32.xlu1 %v5188_v10, %s5574_s30 }
 0xe66   :  { %3150 = vrot.lane.b32.xlu1 %v5188_v10, %s4739_s5  ;;  %s5579_s5 = smov 64  }
 0xebc   :  { %v2135_v47 = vpop.permute.xlu0 %2134  ;;  %v1968_v48 = vpop.permute.xlu1 %1967 }
 0xebd   :  { %4409 = vmatpush3.xpose.msk.msra.mxu0 %vm193_vm2, %v1968_v48  ;;  %4419 = vmatpush3.xpose.msk.msra.mxu1 %vm193_vm2, %v2135_v47 }
 0xebe   :  { %4428 = vmatprep.subr.mxu1 %v4734_v15  ;;  %4413 = vmatprep.subr.mxu0 %v4734_v15 }
 0xec0   :  { %4411 = vmatmul.mubr.msk.f32.vlgmr.msra.gmra.mrb[18].mxu0 %vm193_vm2, %v5178_v38  ;;  %v2133_v40 = vpop.permute.xlu1 %2132  ;;  %v2469_v45 = vpop.permute.xlu0 %2468 }
 0xec1   :  { %4421 = vmatmul.mubr.msk.f32.vlgmr.msra.gmra.mrb[18].mxu1 %vm193_vm2, %v2133_v40  ;;  %4415 = vmatprep.mubr.msk.f32.mxu0 %vm4735_vm1, %v4734_v15 }
 0xec2   :  { %4430 = vmatprep.mubr.msk.f32.mxu1 %vm4735_vm1, %v4734_v15 }
 0xec4   :  { %v2302_v49 = vpop.permute.xlu1 %2301  ;;  %v2650_v51 = vpop.permute.xlu0 %2649 }
 0xec5   :  { %4429 = vmatpush3.xpose.msk.msra.mxu1 %vm193_vm2, %v2302_v49 }
 0xec6   :  { %4438 = vmatprep.subr.mxu1 %v4734_v15 }
 0xec8   :  { %v2300_v50 = vpop.permute.xlu1 %2299  ;;  %v2815_v53 = vpop.permute.xlu0 %2814 }
 0xec9   :  { %4431 = vmatmul.mubr.msk.f32.vlgmr.msra.gmra.mrb[24].mxu1 %vm193_vm2, %v2300_v50 }
 0xeca   :  { %4439 = vmatpush3.xpose.msk.msra.mxu1 %vm193_vm2, %v2469_v45  ;;  %4440 = vmatprep.mubr.msk.f32.mxu1 %vm4735_vm1, %v4734_v15 }
 0xecb   :  { %4448 = vmatprep.subr.mxu1 %v4734_v15 }
 0xecc   :  { %v2467_v52 = vpop.permute.xlu1 %2466  ;;  %v2982_v56 = vpop.permute.xlu0 %2981 }
 0xecd   :  { %4441 = vmatmul.mubr.msk.f32.vlgmr.msra.gmra.mrb[26].mxu1 %vm193_vm2, %v2467_v52 }
 0xece   :  { %4449 = vmatpush3.xpose.msk.msra.mxu1 %vm193_vm2, %v2650_v51  ;;  %4450 = vmatprep.mubr.msk.f32.mxu1 %vm4735_vm1, %v4734_v15 }
 0xecf   :  { %4458 = vmatprep.subr.mxu1 %v4734_v15 }
 0xed0   :  { %v2817_v54 = vpop.permute.xlu1 %2816  ;;  %v3149_v58 = vpop.permute.xlu0 %3148 }
 0xed1   :  { %4451 = vmatmul.mubr.msk.f32.vlgmr.msra.gmra.mrb[28].mxu1 %vm193_vm2, %v5188_v10 }
 0xed2   :  { %4459 = vmatpush3.xpose.msk.msra.mxu1 %vm193_vm2, %v2817_v54  ;;  %4460 = vmatprep.mubr.msk.f32.mxu1 %vm4735_vm1, %v4734_v15 }
 0xed3   :  { %4468 = vmatprep.subr.mxu1 %v4734_v15 }
 0xed4   :  { %v2984_v55 = vpop.permute.xlu1 %2983 }
 0xed5   :  { %4461 = vmatmul.mubr.msk.f32.vlgmr.msra.gmra.mrb[30].mxu1 %vm193_vm2, %v2815_v53 }
 0xed6   :  { %4469 = vmatpush3.xpose.msk.msra.mxu1 %vm193_vm2, %v2984_v55  ;;  %4470 = vmatprep.mubr.msk.f32.mxu1 %vm4735_vm1, %v4734_v15 }
 0xed7   :  { %4478 = vmatprep.subr.mxu1 %v4734_v15 }
 0xed8   :  { %v3151_v57 = vpop.permute.xlu1 %3150 }
 0xed9   :  { %4471 = vmatmul.mubr.msk.f32.vlgmr.msra.gmra.mrb[32].mxu1 %vm193_vm2, %v2982_v56 }
 0xeda   :  { %4479 = vmatpush3.xpose.msk.msra.mxu1 %vm193_vm2, %v3151_v57  ;;  %4480 = vmatprep.mubr.msk.f32.mxu1 %vm4735_vm1, %v4734_v15 }
 0xedb   :  { %4488 = vmatprep.subr.bf16.mxu1 %v4734_v15 }
 0xedd   :  { %4481 = vmatmul.mubr.msk.f32.vlgmr.msra.gmra.mrb[34].mxu1 %vm193_vm2, %v3149_v58 }
 0xede   :  { %4492 = vmatprep.mubr.msk.bf16.mxu1 %vm4735_vm1, %v4734_v15 }
 0xf93   :  { %v2039_v59 = vpop.f32.mrb[18].mxu0 }
 0xf94   :  { %v2043_v60 = vmul.f32 0.35355338, %v2039_v59  ;;  %v4412_v61 = vpop.f32.mrb[19].mxu0  ;;  %v2206_v62 = vpop.f32.mrb[18].mxu1 }
 0xf95   :  { %v2210_v63 = vmul.f32 0.35355338, %v2206_v62  ;;  %v4422_v31 = vpop.f32.mrb[19].mxu1 }
 0xf96   :  { %v2044_v32 = vadd.f32 %v2043_v60, %v4946_v46 }
 0xf97   :  { %v2211_v0 = vadd.f32 %v2210_v63, %v4946_v46 }
 0xf98   :  { %v2045_v1 = vsel %vm193_vm2, %v2044_v32, -inf }
 0xf99   :  { %2046 = vmax.xlane.f32.xlu1 %v2045_v1  ;;  %v2212_v2 = vsel %vm193_vm2, %v2211_v0, -inf }
 0xf9a   :  { %2213 = vmax.xlane.f32.xlu0 %v2212_v2 }
 0xf9c   :  { %v2373_v3 = vpop.f32.mrb[24].mxu1 }
 0xf9d   :  { %v2377_v4 = vmul.f32 0.35355338, %v2373_v3  ;;  %v4432_v5 = vpop.f32.mrb[25].mxu1 }
 0xf9f   :  { %v2378_v6 = vadd.f32 %v2377_v4, %v4946_v46 }
 0xfa0   :  { %v2540_v7 = vpop.f32.mrb[26].mxu1 }
 0xfa1   :  { %v2544_v8 = vmul.f32 0.35355338, %v2540_v7  ;;  %v4442_v9 = vpop.f32.mrb[27].mxu1  ;;  %v2379_v11 = vsel %vm193_vm2, %v2378_v6, -inf }
 0xfa2   :  { %2380 = vmax.xlane.f32.xlu0 %v2379_v11 }
 0xfa3   :  { %v2545_v12 = vadd.f32 %v2544_v8, %v4946_v46 }
 0xfa4   :  { %v2721_v13 = vpop.f32.mrb[28].mxu1 }
 0xfa5   :  { %v2725_v14 = vmul.f32 0.35355338, %v2721_v13  ;;  %v4452_v16 = vpop.f32.mrb[29].mxu1  ;;  %v2546_v17 = vsel %vm193_vm2, %v2545_v12, -inf }
 0xfa6   :  { %2547 = vmax.xlane.f32.xlu0 %v2546_v17 }
 0xfa7   :  { %v2726_v18 = vadd.f32 %v2725_v14, %v5016_v28 }
 0xfa8   :  { %v2888_v19 = vpop.f32.mrb[30].mxu1 }
 0xfa9   :  { %v2892_v20 = vmul.f32 0.35355338, %v2888_v19  ;;  %v4462_v36 = vpop.f32.mrb[31].mxu1  ;;  %v2727_v21 = vsel %vm193_vm2, %v2726_v18, -inf }
 0xfaa   :  { %2728 = vmax.xlane.f32.xlu1 %v2727_v21 }
 0xfab   :  { %v2893_v23 = vadd.f32 %v2892_v20, %v5016_v28 }
 0xfac   :  { %v3055_v24 = vpop.f32.mrb[32].mxu1 }
 0xfad   :  { %v3059_v25 = vmul.f32 0.35355338, %v3055_v24  ;;  %v4472_v26 = vpop.f32.mrb[33].mxu1  ;;  %v2894_v46 = vsel %vm193_vm2, %v2893_v23, -inf }
 0xfae   :  { %2895 = vmax.xlane.f32.xlu0 %v2894_v46 }
 0xfaf   :  { %v3060_v27 = vadd.f32 %v3059_v25, %v5016_v28 }
 0xfb0   :  { %v3222_v29 = vpop.f32.mrb[34].mxu1 }
 0xfb1   :  { %v3226_v34 = vmul.f32 0.35355338, %v3222_v29  ;;  %v4482_v35 = vpop.f32.mrb[35].mxu1  ;;  %v3061_v37 = vsel %vm193_vm2, %v3060_v27, -inf }
 0xfb2   :  { %3062 = vmax.xlane.f32.xlu1 %v3061_v37 }
 0xfb3   :  { %v3227_v39 = vadd.f32 %v3226_v34, %v5016_v28 }
 0xfb5   :  { %v3228_v41 = vsel %vm193_vm2, %v3227_v39, -inf }
 0xfb6   :  { %3229 = vmax.xlane.f32.xlu0 %v3228_v41 }
 0xfc3   :  { %2223 = vrot.lane.b32.xlu1 %v5178_v38, %s5577_s4 }
 0xfc7   :  { %2390 = vrot.lane.b32.xlu1 %v5178_v38, %s5578_s0 }
 0xfcc   :  { %2056 = vrot.lane.b32.xlu0 %v5178_v38, %s5579_s5 }
0x1026   :  { %v2047_v42 = vpop.xlane.xlu1 %2046 }
0x1027   :  { %v2048_v47 = vsub.f32 %v2044_v32, %v2047_v42  ;;  %v2214_v48 = vpop.xlane.xlu0 %2213 }
0x1028   :  { %v2215_v40 = vsub.f32 %v2211_v0, %v2214_v48 }
0x1029   :  { %v2049_v45 = vmul.f32 1.442695, %v2048_v47 }
0x102a   :  { %v2216_v49 = vmul.f32 1.442695, %v2215_v40 }
0x102b   :  { %4664 = vpow2.f32 %v2049_v45 }
0x102c   :  { %4666 = vpow2.f32 %v2216_v49 }
0x102f   :  { %v2381_v50 = vpop.xlane.xlu0 %2380 }
0x1030   :  { %v2382_v58 = vsub.f32 %v2378_v6, %v2381_v50 }
0x1032   :  { %v2383_v61 = vmul.f32 1.442695, %v2382_v58 }
0x1033   :  { %v2548_v54 = vpop.xlane.xlu0 %2547 }
0x1034   :  { %v2549_v59 = vsub.f32 %v2545_v12, %v2548_v54  ;;  %4668 = vpow2.f32 %v2383_v61 }
0x1035   :  { %v5274_v28 = vpop.eup %4664 }
0x1036   :  { %v5276_v51 = vpop.eup %4666  ;;  %v2051_v52 = vsel %vm193_vm2, %v5274_v28, 0.0  ;;  %v2550_v63 = vmul.f32 1.442695, %v2549_v59 }
0x1037   :  { %2052 = vadd.xlane.f32.xlu1 %v2051_v52  ;;  %v2218_v53 = vsel %vm193_vm2, %v5276_v51, 0.0  ;;  %v2729_v60 = vpop.xlane.xlu1 %2728 }
0x1038   :  { %2219 = vadd.xlane.f32.xlu0 %v2218_v53  ;;  %v2730_v62 = vsub.f32 %v2726_v18, %v2729_v60  ;;  %4670 = vpow2.f32 %v2550_v63 }
0x103a   :  { %v2731_v0 = vmul.f32 1.442695, %v2730_v62 }
0x103b   :  { %v2896_v55 = vpop.xlane.xlu0 %2895 }
0x103c   :  { %v2897_v31 = vsub.f32 %v2893_v23, %v2896_v55  ;;  %4672 = vpow2.f32 %v2731_v0 }
0x103e   :  { %v2898_v2 = vmul.f32 1.442695, %v2897_v31 }
0x103f   :  { %v3063_v32 = vpop.xlane.xlu1 %3062 }
0x1040   :  { %v3064_v1 = vsub.f32 %v3060_v27, %v3063_v32  ;;  %4674 = vpow2.f32 %v2898_v2  ;;  %v4584_v32 = vld [vmem:[%s5573_s29 + $0x10] sm:$0xff]   ;;  %v4585_v2 = vld [vmem:[%s5573_s29 + $0x18] sm:$0xff]  }
0x1041   :  { %4489 = vmatpush3.bf16.msra.mxu1 %v4584_v32  ;;  %v4111_v32 = vld [vmem:[%s5524_s8 + $0x1] ss:$0 sm:$0xff] }
0x1042   :  { %v3065_v3 = vmul.f32 1.442695, %v3064_v1  ;;  %4490 = vmatprep.subr.bf16.mxu1 %v4734_v15 }
0x1043   :  { %v3230_v56 = vpop.xlane.xlu0 %3229  ;;  %v2224_v19 = vpop.permute.xlu1 %2223 }
0x1044   :  { %v3231_v4 = vsub.f32 %v3227_v39, %v3230_v56  ;;  %4676 = vpow2.f32 %v3065_v3 }
0x1045   :  { %4491 = vmatpush3.bf16.msra.mxu1 %v4585_v2 }
0x1046   :  { %v3232_v5 = vmul.f32 1.442695, %v3231_v4  ;;  %4504 = vmatprep.subr.bf16.mxu1 %v4734_v15 }
0x1047   :  { %v2057_v57 = vpop.permute.xlu0 %2056  ;;  %v2391_v20 = vpop.permute.xlu1 %2390 }
0x1048   :  { %4414 = vmatpush3.msra.mxu0 %v2057_v57  ;;  %2738 = vrot.lane.b32.xlu1 %v5188_v10, %s5579_s5  ;;  %4678 = vpow2.f32 %v3232_v5 }
0x1049   :  { %4423 = vmatprep.subr.mxu0 %v4734_v15 }
0x104e   :  { %2557 = vrot.lane.b32.xlu0 %v5178_v38, %s5580_s24  ;;  %v4669_v38 = vpop.eup %4668 }
0x104f   :  { %v4671_v6 = vpop.eup %4670  ;;  %v2385_v7 = vsel %vm193_vm2, %v4669_v38, 0.0 }
0x1050   :  { %v4673_v8 = vpop.eup %4672  ;;  %v2552_v9 = vsel %vm193_vm2, %v4671_v6, 0.0 }
0x1051   :  { %v5289_v11 = vpop.eup %4674  ;;  %v2733_v12 = vsel %vm193_vm2, %v4673_v8, 0.0 }
0x1052   :  { %v5292_v13 = vpop.eup %4676  ;;  %v2900_v14 = vsel %vm193_vm2, %v5289_v11, 0.0 }
0x1053   :  { %v3067_v16 = vsel %vm193_vm2, %v5292_v13, 0.0  ;;  %v5298_v17 = vpop.eup %4678 }
0x1054   :  { %v3234_v18 = vsel %vm193_vm2, %v5298_v17, 0.0 }
0x106c   :  { %2386 = vadd.xlane.f32.xlu1 %v2385_v7 }
0x106d   :  { %2553 = vadd.xlane.f32.xlu0 %v2552_v9 }
0x1070   :  { %2734 = vadd.xlane.f32.xlu1 %v2733_v12 }
0x1071   :  { %2901 = vadd.xlane.f32.xlu0 %v2900_v14 }
0x1074   :  { %3068 = vadd.xlane.f32.xlu1 %v3067_v16 }
0x1078   :  { %3235 = vadd.xlane.f32.xlu1 %v3234_v18 }
0x1087   :  { %2905 = vrot.lane.b32.xlu0 %v5188_v10, %s5577_s4 }
0x1089   :  { %3072 = vrot.lane.b32.xlu1 %v5188_v10, %s5578_s0 }
0x108b   :  { %3239 = vrot.lane.b32.xlu0 %v5188_v10, %s5580_s24 }
0x10c4   :  { %v2053_v36 = vpop.xlane.xlu1 %2052 }
0x10c5   :  { %4680 = vrcp.f32 %v2053_v36  ;;  %v2220_v21 = vpop.xlane.xlu0 %2219 }
0x10c6   :  { %4682 = vrcp.f32 %v2220_v21 }
0x10c8   :  { %v2739_v10 = vpop.permute.xlu1 %2738 }
0x10c9   :  { %v2558_v46 = vpop.permute.xlu0 %2557 }
0x10cf   :  { %v4681_v23 = vpop.eup %4680 }
0x10d0   :  { %v2055_v24 = vmul.f32 %v4681_v23, %v5274_v28  ;;  %v4683_v25 = vpop.eup %4682 }
0x10d1   :  { %v2222_v26 = vmul.f32 %v4683_v25, %v5276_v51 }
0x10d2   :  { %4416 = vmatmul.mubr.msk.f32.vlgmr.msra.gmra.mrb[32].mxu0 %vm193_vm2, %v2055_v24 }
0x10d3   :  { %4424 = vmatpush3.msra.mxu0 %v2224_v19  ;;  %4425 = vmatprep.mubr.msk.f32.mxu0 %vm4735_vm1, %v4734_v15 }
0x10d4   :  { %4433 = vmatprep.subr.mxu0 %v4734_v15 }
0x10d6   :  { %4426 = vmatmul.mubr.msk.f32.vlgmr.msra.gmra.mrb[34].mxu0 %vm193_vm2, %v2222_v26 }
0x10d7   :  { %4434 = vmatpush3.msra.mxu0 %v2391_v20  ;;  %4435 = vmatprep.mubr.msk.f32.mxu0 %vm4735_vm1, %v4734_v15 }
0x10d8   :  { %4443 = vmatprep.subr.mxu0 %v4734_v15 }
0x10f9   :  { %v2387_v27 = vpop.xlane.xlu1 %2386 }
0x10fa   :  { %4684 = vrcp.f32 %v2387_v27  ;;  %v2554_v29 = vpop.xlane.xlu0 %2553  ;;  %v4105_v27 = vld [vmem:[%s5523_s7 + $0x1] ss:$0 sm:$0xff] }
0x10fb   :  { %4686 = vrcp.f32 %v2554_v29 }
0x10fd   :  { %v2735_v34 = vpop.xlane.xlu1 %2734 }
0x10fe   :  { %4688 = vrcp.f32 %v2735_v34  ;;  %v2902_v35 = vpop.xlane.xlu0 %2901 }
0x10ff   :  { %4690 = vrcp.f32 %v2902_v35 }
0x1101   :  { %v3069_v37 = vpop.xlane.xlu1 %3068 }
0x1102   :  { %4692 = vrcp.f32 %v3069_v37  ;;  %v2906_v28 = vpop.permute.xlu0 %2905 }
0x1104   :  { %v4685_v39 = vpop.eup %4684 }
0x1105   :  { %v2389_v41 = vmul.f32 %v4685_v39, %v4669_v38  ;;  %v4687_v42 = vpop.eup %4686  ;;  %v3236_v48 = vpop.xlane.xlu1 %3235 }
0x1106   :  { %v2556_v47 = vmul.f32 %v4687_v42, %v4671_v6  ;;  %4694 = vrcp.f32 %v3236_v48  ;;  %v3240_v55 = vpop.permute.xlu0 %3239 }
0x1107   :  { %4436 = vmatmul.mubr.msk.f32.vlgmr.msra.gmra.mrb[36].mxu0 %vm193_vm2, %v2389_v41 }
0x1108   :  { %4444 = vmatpush3.msra.mxu0 %v2558_v46  ;;  %4445 = vmatprep.mubr.msk.f32.mxu0 %vm4735_vm1, %v4734_v15  ;;  %v4689_v40 = vpop.eup %4688 }
0x1109   :  { %4453 = vmatprep.subr.mxu0 %v4734_v15  ;;  %v2737_v45 = vmul.f32 %v4689_v40, %v4673_v8  ;;  %v4691_v49 = vpop.eup %4690  ;;  %v3073_v52 = vpop.permute.xlu1 %3072 }
0x110a   :  { %v2904_v50 = vmul.f32 %v4691_v49, %v5289_v11 }
0x110b   :  { %4446 = vmatmul.mubr.msk.f32.vlgmr.msra.gmra.mrb[38].mxu0 %vm193_vm2, %v2556_v47 }
0x110c   :  { %4454 = vmatpush3.msra.mxu0 %v2739_v10  ;;  %4455 = vmatprep.mubr.msk.f32.mxu0 %vm4735_vm1, %v4734_v15  ;;  %v4693_v51 = vpop.eup %4692 }
0x110d   :  { %4463 = vmatprep.subr.mxu0 %v4734_v15  ;;  %v3071_v53 = vmul.f32 %v4693_v51, %v5292_v13 }
0x110f   :  { %4456 = vmatmul.mubr.msk.f32.vlgmr.msra.gmra.mrb[40].mxu0 %vm193_vm2, %v2737_v45 }
0x1110   :  { %4464 = vmatpush3.msra.mxu0 %v2906_v28  ;;  %4465 = vmatprep.mubr.msk.f32.mxu0 %vm4735_vm1, %v4734_v15  ;;  %v4695_v54 = vpop.eup %4694 }
0x1111   :  { %4473 = vmatprep.subr.mxu0 %v4734_v15  ;;  %v3238_v56 = vmul.f32 %v4695_v54, %v5298_v17 }
0x1113   :  { %4466 = vmatmul.mubr.msk.f32.vlgmr.msra.gmra.mrb[42].mxu0 %vm193_vm2, %v2904_v50 }
0x1114   :  { %4474 = vmatpush3.msra.mxu0 %v3073_v52  ;;  %4475 = vmatprep.mubr.msk.f32.mxu0 %vm4735_vm1, %v4734_v15 }
0x1115   :  { %4483 = vmatprep.subr.mxu0 %v4734_v15 }
0x1117   :  { %4476 = vmatmul.mubr.msk.f32.vlgmr.msra.gmra.mrb[44].mxu0 %vm193_vm2, %v3071_v53 }
0x1118   :  { %4484 = vmatpush3.msra.mxu0 %v3240_v55  ;;  %4485 = vmatprep.mubr.msk.f32.mxu0 %vm4735_vm1, %v4734_v15 }
0x1119   :  { %4496 = vmatprep.subr.bf16.mxu0 %v4734_v15 }
0x111b   :  { %4486 = vmatmul.mubr.msk.f32.vlgmr.msra.gmra.mrb[46].mxu0 %vm193_vm2, %v3238_v56  ;;  %v4587_v56 = vld [vmem:[%s5526_s10 + $0x18] sm:$0xff]  }
0x111c   :  { %4500 = vmatprep.mubr.msk.bf16.mxu0 %vm4735_vm1, %v4734_v15 }
0x11a5   :  { %v2128_v57 = vpop.f32.mrb[32].mxu0 }
0x11a6   :  { %v4417_v58 = vpop.f32.mrb[33].mxu0 }
0x11a9   :  { %v2295_v59 = vpop.f32.mrb[34].mxu0 }
0x11aa   :  { %v4427_v60 = vpop.f32.mrb[35].mxu0 }
0x11da   :  { %v2462_v61 = vpop.f32.mrb[36].mxu0 }
0x11db   :  { %v4437_v62 = vpop.f32.mrb[37].mxu0 }
0x11de   :  { %v2629_v63 = vpop.f32.mrb[38].mxu0 }
0x11df   :  { %v4447_v31 = vpop.f32.mrb[39].mxu0 }
0x11e2   :  { %v2810_v0 = vpop.f32.mrb[40].mxu0 }
0x11e3   :  { %v4457_v1 = vpop.f32.mrb[41].mxu0 }
0x11e6   :  { %v2977_v3 = vpop.f32.mrb[42].mxu0 }
0x11e7   :  { %v4557_v4 = vpack.i.bf16 %v2977_v3, %v2295_v59  ;;  %v4467_v5 = vpop.f32.mrb[43].mxu0  ;;  %v4112_v3 = vld [vmem:[%s5525_s9 + $0x1] ss:$0 sm:$0xff] }
0x11e9   :  { %4558 = vrot.lane.b32.xlu1 %v4557_v4, %s5581_s23 }
0x11ea   :  { %v3144_v38 = vpop.f32.mrb[44].mxu0 }
0x11eb   :  { %v4562_v6 = vpack.i.bf16 %v3144_v38, %v2462_v61  ;;  %v4477_v7 = vpop.f32.mrb[45].mxu0 }
0x11ec   :  { %v4588_v7 = vld [vmem:[%s5528_s12 + $0x20] sm:$0xff]  }
0x11ed   :  { %4563 = vrot.lane.b32.xlu0 %v4562_v6, %s5582_s6 }
0x11ee   :  { %v3311_v8 = vpop.f32.mrb[46].mxu0 }
0x11ef   :  { %v4567_v9 = vpack.i.bf16 %v3311_v8, %v2629_v63  ;;  %v4487_v11 = vpop.f32.mrb[47].mxu0  ;;  %v4589_v8 = vld [vmem:[%s5528_s12 + $0x28] sm:$0xff]  }
0x11f0   :  { %v4591_v11 = vld [vmem:[%s5528_s12 + $0x38] sm:$0xff]  }
0x11f1   :  { %4568 = vrot.lane.b32.xlu1 %v4567_v9, %s5583_s26  ;;  %v4590_v9 = vld [vmem:[%s5528_s12 + $0x30] sm:$0xff]   ;;  %s4751_s12 = smov [#allocation2]  }
0x125b   :  { %v4559_v12 = vpop.permute.xlu1 %4558 }
0x125c   :  { %v4561_v14 = vunpack.i.h.bf16 %v4559_v12  ;;  %v4560_v16 = vunpack.i.l.bf16 %v4559_v12  ;;  %v4118_v12 = vld [vmem:[%s5527_s11 + $0x1] ss:$0 sm:$0xff] }
0x125e   :  { %v3327_v20 = vsel %vm193_vm2, %v2810_v0, %v4561_v14  ;;  %v2645_v36 = vsel %vm193_vm2, %v2128_v57, %v4560_v16 }
0x125f   :  { %v4564_v13 = vpop.permute.xlu0 %4563 }
0x1260   :  { %v4566_v17 = vunpack.i.h.bf16 %v4564_v13  ;;  %v4565_v18 = vunpack.i.l.bf16 %v4564_v13 }
0x1262   :  { %v3328_v24 = vsel %vm875_vm3, %v3327_v20, %v4566_v17  ;;  %v2646_v25 = vsel %vm875_vm3, %v2645_v36, %v4565_v18 }
0x1263   :  { %v4569_v19 = vpop.permute.xlu1 %4568 }
0x1264   :  { %v4571_v21 = vunpack.i.h.bf16 %v4569_v19  ;;  %v4570_v23 = vunpack.i.l.bf16 %v4569_v19 }
0x1266   :  { %v3329_v26 = vsel %vm877_vm4, %v3328_v24, %v4571_v21  ;;  %v2647_v10 = vsel %vm877_vm4, %v2646_v25, %v4570_v23 }
0x1267   :  { %v3337_v46 = vpack.c.bf16 %v3329_v26, %v2647_v10 }
0x1269   :  { %4493 = vmatmul.mubr.msk.bf16.vlgmr.msra.gmra.mrb[36].mxu1 %vm77_vm0, %v3337_v46 }
0x126a   :  { %4512 = vmatprep.mubr.msk.bf16.mxu1 %vm4735_vm1, %v4734_v15  ;;  %4505 = vmatpush3.bf16.msra.mxu1 %v4588_v7 }
0x126b   :  { %4506 = vmatprep.subr.bf16.mxu1 %v4734_v15 }
0x126e   :  { %4507 = vmatpush3.bf16.msra.mxu1 %v4589_v8 }
0x126f   :  { %4508 = vmatprep.subr.bf16.mxu1 %v4734_v15 }
0x1272   :  { %4509 = vmatpush3.bf16.msra.mxu1 %v4590_v9 }
0x1273   :  { %4510 = vmatprep.subr.bf16.mxu1 %v4734_v15 }
0x1276   :  { %4511 = vmatpush3.bf16.msra.mxu1 %v4591_v11 }
0x133c   :  { %v3393_v29 = vpop.f32.mrb[36].mxu1 }
0x133d   :  { %v3394_v34 = vadd.f32 %v4105_v27, %v3393_v29  ;;  %v4494_v35 = vpop.f32.mrb[37].mxu1 }
0x133e   :  { %v3396_v37 = vpop.f32.mrb[38].mxu1 }
0x133f   :  { %v3397_v39 = vadd.f32 %v4105_v27, %v3396_v37  ;;  %v4495_v41 = vpop.f32.mrb[39].mxu1  ;;  %v3400_v42 = vadd.f32 %v3394_v34, %v5166_v30 }
0x1341   :  { %v3406_v47 = vsel %vm77_vm0, %v3400_v42, 0.0  ;;  %v3401_v48 = vadd.f32 %v3397_v39, %v5168_v33  ;;  %v4586_v33 = vld [vmem:[%s5526_s10 + $0x10] sm:$0xff]  }
0x1342   :  { %3407 = vadd.xlane.f32.xlu0 %v3406_v47  ;;  %4497 = vmatpush3.bf16.msra.mxu0 %v4586_v33 }
0x1343   :  { %v3409_v40 = vsel %vm77_vm0, %v3401_v48, 0.0  ;;  %4498 = vmatprep.subr.bf16.mxu0 %v4734_v15 }
0x1344   :  { %3410 = vadd.xlane.f32.xlu1 %v3409_v40  ;;  %v4131_v40 = vld [vmem:[%s5529_s13 + $0x1] ss:$0 sm:$0xff]  ;;  %s4011_s13 = sshll.u32 %s4751_s12, 4  ;;  %s4012_s13 = int_to_ptr.vmem [resolvable:$true] %s4011_s13 }
0x1345   :  { %s4710_s30 = scalar_lea.vmem %s4012_s13, 32  ;;  %p4715_p1 = scmp.lt.s32.totalorder %s4012_s13, %s4012_s13 }
0x1346   :  { %4499 = vmatpush3.bf16.msra.mxu0 %v4587_v56  ;;  %p4711_p0 = scmp.ne.s32.totalorder %s4012_s13, %s4710_s30  ;;  %p4716_p2 = scmp.lt.s32.totalorder %s4710_s30, %s4710_s30 }
0x1347   :  { %4516 = vmatprep.subr.bf16.mxu0 %v4734_v15 }
0x1348   :  { %p4717_p3 = por %p4716_p2, %p4715_p1 }
0x134a   :  { %p4718_p4 = pnand %p4717_p3, %p4711_p0 }
0x13cf   :  { %v3408_v45 = vpop.xlane.xlu0 %3407 }
0x13d0   :  { %v3412_v49 = vmul.f32 0.03125, %v3408_v45 }
0x13d1   :  { %v3411_v28 = vpop.xlane.xlu1 %3410 }
0x13d2   :  { %v3414_v50 = vsub.f32 %v3400_v42, %v3412_v49  ;;  %v3413_v51 = vmul.f32 0.03125, %v3411_v28 }
0x13d4   :  { %v3415_v52 = vsub.f32 %v3401_v48, %v3413_v51  ;;  %v3416_v53 = vmul.f32 %v3414_v50, %v3414_v50 }
0x13d6   :  { %v3418_v54 = vsel %vm77_vm0, %v3416_v53, 0.0  ;;  %v3417_v55 = vmul.f32 %v3415_v52, %v3415_v52 }
0x13d7   :  { %3419 = vadd.xlane.f32.xlu0 %v3418_v54 }
0x13d8   :  { %v3421_v30 = vsel %vm77_vm0, %v3417_v55, 0.0 }
0x13db   :  { %3422 = vadd.xlane.f32.xlu0 %v3421_v30 }
0x1464   :  { %v3420_v57 = vpop.xlane.xlu0 %3419 }
0x1465   :  { %v3424_v58 = vmul.f32 0.03125, %v3420_v57 }
0x1467   :  { %v3426_v59 = vadd.f32 1e-12, %v3424_v58 }
0x1468   :  { %v3423_v60 = vpop.xlane.xlu0 %3422 }
0x1469   :  { %4696 = vrsqrt.f32 %v3426_v59  ;;  %v3425_v61 = vmul.f32 0.03125, %v3423_v60 }
0x146b   :  { %v3427_v62 = vadd.f32 1e-12, %v3425_v61 }
0x146d   :  { %4698 = vrsqrt.f32 %v3427_v62 }
0x1473   :  { %v4697_v63 = vpop.eup %4696 }
0x1474   :  { %v3430_v31 = vmul.f32 %v4697_v63, %v3414_v50 }
0x1476   :  { %v3438_v1 = vmul.f32 %v4111_v32, %v3430_v31 }
0x1477   :  { %v4699_v0 = vpop.eup %4698 }
0x1478   :  { %v3431_v2 = vmul.f32 %v4699_v0, %v3415_v52  ;;  %v3446_v5 = vadd.f32 %v4112_v3, %v3438_v1  ;;  %v4593_v0 = vld [vmem:[%s5532_s16 + $0x8] sm:$0xff]  }
0x147a   :  { %v3439_v4 = vmul.f32 %v4111_v32, %v3431_v2  ;;  %v4592_v32 = vld [vmem:[%s5532_s16] sm:$0xff]  }
0x147c   :  { %v3447_v38 = vadd.f32 %v4112_v3, %v3439_v4 }
0x147e   :  { %v3455_v6 = vpack.c.bf16 %v3447_v38, %v3446_v5 }
0x1480   :  { %4501 = vmatmul.mubr.msk.bf16.vlgmr.msra.gmra.mrb[48].mxu0 %vm77_vm0, %v3455_v6 }
0x1481   :  { %4520 = vmatprep.mubr.msk.bf16.mxu0 %vm4735_vm1, %v4734_v15  ;;  %4517 = vmatpush3.bf16.msra.mxu0 %v4592_v32 }
0x1482   :  { %4518 = vmatprep.subr.bf16.mxu0 %v4734_v15  ;;  %v4139_v15 = vld [vmem:[%s5530_s14 + $0x1] ss:$0 sm:$0xff] }
0x1485   :  { %4519 = vmatpush3.bf16.msra.mxu0 %v4593_v0 }
0x1553   :  { %v3511_v13 = vpop.f32.mrb[48].mxu0 }
0x1554   :  { %v3512_v14 = vadd.f32 %v4118_v12, %v3511_v13  ;;  %v4502_v16 = vpop.f32.mrb[49].mxu0  ;;  %v4140_v13 = vld [vmem:[%s5531_s15 + $0x1] ss:$0 sm:$0xff] }
0x1555   :  { %v3514_v17 = vpop.f32.mrb[50].mxu0 }
0x1556   :  { %v3520_v18 = vmul.f32 0.044715, %v3512_v14  ;;  %v3515_v19 = vadd.f32 %v4118_v12, %v3514_v17  ;;  %v4503_v20 = vpop.f32.mrb[51].mxu0  ;;  %v3518_v37 = vmul.f32 0.5, %v3512_v14 }
0x1557   :  { %v4596_v20 = vld [vmem:[%s5534_s18 + $0x4] ss:$8 sps:$4 sm:$0xff]  }
0x1558   :  { %v3522_v36 = vmul.f32 %v3520_v18, %v3512_v14  ;;  %v3521_v21 = vmul.f32 0.044715, %v3515_v19  ;;  %v3519_v39 = vmul.f32 0.5, %v3515_v19  ;;  %3783 = vmatprep.subr.bf16.mxu0 %v4596_v20 }
0x155a   :  { %v3524_v23 = vmul.f32 %v3522_v36, %v3512_v14  ;;  %v3523_v24 = vmul.f32 %v3521_v21, %v3515_v19  ;;  %v4594_v36 = vld [vmem:[%s5534_s18] ss:$8 sps:$4 sm:$0xff]   ;;  %v4599_v21 = vld [vmem:[%s5534_s18 + $0x14] ss:$8 sps:$4 sm:$0xff]  }
0x155c   :  { %v3526_v25 = vadd.f32 %v3524_v23, %v3512_v14  ;;  %v3525_v26 = vmul.f32 %v3523_v24, %v3515_v19  ;;  %v4597_v23 = vld [vmem:[%s5534_s18 + $0x10] ss:$8 sps:$4 sm:$0xff]   ;;  %v4750_v24 = vmov 0  }
0x155e   :  { %v3528_v10 = vmul.f32 0.7978846, %v3526_v25  ;;  %v3527_v46 = vadd.f32 %v3525_v26, %v3515_v19  ;;  %v4600_v25 = vld [vmem:[%s5536_s20 + $0x40] sm:$0xff]  }
0x155f   :  { %v4601_v26 = vld [vmem:[%s5536_s20] sm:$0xff]   ;;  %4262 = vmatprep.subr.bf16.mxu1 %v4600_v25 }
0x1560   :  { %4700 = vtanh.f32 %v3528_v10  ;;  %v3529_v27 = vmul.f32 0.7978846, %v3527_v46  ;;  %v4602_v10 = vld [vmem:[%s5536_s20 + $0x48] sm:$0xff]  }
0x1561   :  { %v4603_v46 = vld [vmem:[%s5536_s20 + $0x8] sm:$0xff]  }
0x1562   :  { %4702 = vtanh.f32 %v3529_v27  ;;  %v4604_v27 = vld [vmem:[%s5536_s20 + $0x50] sm:$0xff]  }
0x156a   :  { %v4701_v29 = vpop.eup %4700 }
0x156b   :  { %v3532_v34 = vadd.f32 1.0, %v4701_v29  ;;  %v4605_v29 = vld [vmem:[%s5536_s20 + $0x10] sm:$0xff]  }
0x156c   :  { %v4703_v35 = vpop.eup %4702 }
0x156d   :  { %v3533_v41 = vadd.f32 1.0, %v4703_v35  ;;  %v3534_v42 = vmul.f32 %v3532_v34, %v3518_v37  ;;  %v4606_v34 = vld [vmem:[%s5536_s20 + $0x58] sm:$0xff]   ;;  %v4608_v37 = vld [vmem:[%s5536_s20 + $0x60] sm:$0xff]  }
0x156e   :  { %v4607_v35 = vld [vmem:[%s5536_s20 + $0x18] sm:$0xff]  }
0x156f   :  { %v3535_v47 = vmul.f32 %v3533_v41, %v3519_v39  ;;  %v4609_v39 = vld [vmem:[%s5536_s20 + $0x20] sm:$0xff]   ;;  %v4610_v41 = vld [vmem:[%s5536_s20 + $0x68] sm:$0xff]  }
0x1571   :  { %v3547_v48 = vpack.c.bf16 %v3535_v47, %v3534_v42  ;;  %v4611_v42 = vld [vmem:[%s5536_s20 + $0x28] sm:$0xff]   ;;  %v4141_v47 = vld [vmem:[%s5533_s17] ss:$0 sm:$0xff] }
0x1573   :  { %4513 = vmatmul.mubr.msk.bf16.vlgmr.msra.gmra.mrb[40].mxu1 %vm1805_vm5, %v3547_v48 }
0x1574   :  { %4263 = vmatpush3.bf16.msra.mxu1 %v4601_v26 }
0x1575   :  { %4264 = vmatprep.subr.bf16.mxu1 %v4602_v10 }
0x1578   :  { %4265 = vmatpush3.bf16.msra.mxu1 %v4603_v46 }
0x1579   :  { %4266 = vmatprep.subr.bf16.mxu1 %v4604_v27 }
0x157c   :  { %4267 = vmatpush3.bf16.msra.mxu1 %v4605_v29 }
0x157d   :  { %4268 = vmatprep.subr.bf16.mxu1 %v4606_v34 }
0x1580   :  { %4269 = vmatpush3.bf16.msra.mxu1 %v4607_v35 }
0x1581   :  { %4270 = vmatprep.subr.bf16.mxu1 %v4608_v37 }
0x1584   :  { %4271 = vmatpush3.bf16.msra.mxu1 %v4609_v39 }
0x1585   :  { %4272 = vmatprep.subr.bf16.mxu1 %v4610_v41 }
0x1588   :  { %4273 = vmatpush3.bf16.msra.mxu1 %v4611_v42 }
0x1646   :  { %v3615_v45 = vpop.f32.mrb[40].mxu1 }
0x1647   :  { %v3616_v49 = vadd.f32 %v4131_v40, %v3615_v45  ;;  %v4514_v28 = vpop.f32.mrb[41].mxu1 }
0x1648   :  { %v3618_v50 = vpop.f32.mrb[42].mxu1 }
0x1649   :  { %v3622_v51 = vadd.f32 %v3616_v49, %v3446_v5  ;;  %v3619_v52 = vadd.f32 %v4131_v40, %v3618_v50  ;;  %v4515_v53 = vpop.f32.mrb[43].mxu1 }
0x164a   :  { %v4613_v53 = vld [vmem:[%s5536_s20 + $0x30] sm:$0xff]  }
0x164b   :  { %v3623_v54 = vadd.f32 %v3619_v52, %v3447_v38  ;;  %v3628_v55 = vsel %vm77_vm0, %v3622_v51, 0.0  ;;  %v4612_v52 = vld [vmem:[%s5536_s20 + $0x70] sm:$0xff]  }
0x164c   :  { %3629 = vadd.xlane.f32.xlu1 %v3628_v55  ;;  %4274 = vmatprep.subr.bf16.mxu1 %v4612_v52  ;;  %v4615_v55 = vld [vmem:[%s5536_s20 + $0x38] sm:$0xff]  }
0x164d   :  { %v3631_v30 = vsel %vm77_vm0, %v3623_v54, 0.0  ;;  %4275 = vmatpush3.bf16.msra.mxu1 %v4613_v53 }
0x164e   :  { %3632 = vadd.xlane.f32.xlu0 %v3631_v30  ;;  %v3747_v30 = vld [vmem:[%s5535_s19] sm:$0x3] }
0x16d9   :  { %v3630_v33 = vpop.xlane.xlu1 %3629 }
0x16da   :  { %v3634_v56 = vmul.f32 0.03125, %v3630_v33  ;;  %v3753_v33 = vrot.slane %v3747_v30, %v271_v44  ;;  %v4150_v44 = vld [vmem:[%s5537_s21] ss:$0 sm:$0xff] }
0x16db   :  { %v3633_v57 = vpop.xlane.xlu0 %3632 }
0x16dc   :  { %v3636_v58 = vsub.f32 %v3622_v51, %v3634_v56  ;;  %v3635_v59 = vmul.f32 0.03125, %v3633_v57  ;;  %v3757_v56 = vrot.slane %v3747_v30, %v959_v22 }
0x16de   :  { %v3637_v60 = vsub.f32 %v3623_v54, %v3635_v59  ;;  %v3638_v61 = vmul.f32 %v3636_v58, %v3636_v58  ;;  %v4614_v54 = vld [vmem:[%s5536_s20 + $0x78] sm:$0xff]  }
0x16df   :  { %4276 = vmatprep.subr.bf16.mxu1 %v4614_v54 }
0x16e0   :  { %v3640_v62 = vsel %vm77_vm0, %v3638_v61, 0.0  ;;  %v3639_v63 = vmul.f32 %v3637_v60, %v3637_v60  ;;  %4277 = vmatpush3.bf16.msra.mxu1 %v4615_v55 }
0x16e1   :  { %3641 = vadd.xlane.f32.xlu1 %v3640_v62 }
0x16e2   :  { %v3643_v31 = vsel %vm77_vm0, %v3639_v63, 0.0 }
0x16e3   :  { %3644 = vadd.xlane.f32.xlu0 %v3643_v31 }
0x176e   :  { %v3642_v1 = vpop.xlane.xlu1 %3641 }
0x176f   :  { %v3646_v2 = vmul.f32 0.03125, %v3642_v1 }
0x1770   :  { %v3645_v3 = vpop.xlane.xlu0 %3644 }
0x1771   :  { %v3648_v4 = vadd.f32 1e-12, %v3646_v2  ;;  %v3647_v5 = vmul.f32 0.03125, %v3645_v3 }
0x1773   :  { %4704 = vrsqrt.f32 %v3648_v4  ;;  %v3649_v38 = vadd.f32 1e-12, %v3647_v5 }
0x1775   :  { %4706 = vrsqrt.f32 %v3649_v38 }
0x177d   :  { %v4705_v6 = vpop.eup %4704 }
0x177e   :  { %v3652_v7 = vmul.f32 %v4705_v6, %v3636_v58 }
0x177f   :  { %v4707_v8 = vpop.eup %4706 }
0x1780   :  { %v3653_v9 = vmul.f32 %v4707_v8, %v3637_v60  ;;  %v3660_v11 = vmul.f32 %v4139_v15, %v3652_v7 }
0x1782   :  { %v3661_v12 = vmul.f32 %v4139_v15, %v3653_v9  ;;  %v3668_v16 = vadd.f32 %v4140_v13, %v3660_v11 }
0x1784   :  { %v3669_v14 = vadd.f32 %v4140_v13, %v3661_v12 }
0x1786   :  { %v3671_v17 = vrot.slane %v3669_v14, 7 }
0x1788   :  { %v3674_v18 = vsel %vm3673_vm6, %v3668_v16, %v3671_v17 }
0x1789   :  { %v3680_v19 = vpack.c.bf16 %v3674_v18, %v3674_v18 }
0x178b   :  { %4521 = vmatmul.mubr.msk.bf16.vlgmr.msra.gmra.mrb[52].mxu0 %vm77_vm0, %v3680_v19 }
0x178c   :  { %3784 = vmatpush1.bf16.msra.mxu0 %v4594_v36  ;;  %3815 = vmatprep.mubr.bf16.mxu0 %v4750_v24 }
0x178d   :  { %3785 = vmatprep.subr.bf16.mxu0 %v4599_v21 }
0x1790   :  { %3786 = vmatpush1.bf16.msra.mxu0 %v4597_v23 }
0x185e   :  { %v3736_v48 = vpop.f32.mrb[52].mxu0 }
0x185f   :  { %v3737_v40 = vadd.f32 %v4141_v47, %v3736_v48  ;;  %v4522_v45 = vpop.f32.mrb[53].mxu0 }
0x1860   :  { %v3739_v49 = vpop.f32.mrb[54].mxu0 }
0x1861   :  { %4708 = vtanh.f32 %v3737_v40  ;;  %v4523_v28 = vpop.f32.mrb[55].mxu0 }
0x186b   :  { %v4709_v50 = vpop.eup %4708 }
0x186c   :  { %v3748_v51 = vpack.c.bf16 %v4709_v50, %v4709_v50 }
0x186e   :  { %4149 = vmatmul.mubr.msk.bf16.vlgmr.msra.gmra.mrb[56].mxu0 %vm77_vm0, %v3748_v51 }
0x1941   :  { %v3817_v57 = vpop.f32.mrb[56].mxu0 }
0x1942   :  { %v3818_v58 = vadd.f32 %v3817_v57, %v3753_v33  ;;  %v3819_v59 = vpop.f32.mrb[57].mxu0 }
0x1943   :  { %v3820_v60 = vadd.f32 %v3819_v59, %v3757_v56  ;;  %v3821_v61 = vpop.f32.mrb[58].mxu0 }
0x1944   :  { %v3824_v62 = vmax.f32 %v3818_v58, 0.0  ;;  %v3822_v63 = vpop.f32.mrb[59].mxu0 }
0x1945   :  { %v3825_v31 = vmax.f32 %v3820_v60, 0.0 }
0x1946   :  { %v3859_v0 = vpack.c.bf16 %v3824_v62, %v3824_v62 }
0x1947   :  { %v3860_v32 = vpack.c.bf16 %v3825_v31, %v3825_v31 }
0x1949   :  { %3995 = vmatprep.mubr.bf16.mxu1 %v3860_v32 }
0x194a   :  { %3996 = vmatmul.mubr.bf16.vlgmr.msra.gmra.mrb[44].mxu1 %v3859_v0 }
0x1a1d   :  { %v4278_v1 = vpop.f32.mrb[44].mxu1 }
0x1a1e   :  { %v4279_v2 = vpop.f32.mrb[45].mxu1 }
0x1a1f   :  { %v4280_v43 = vadd.f32 %v4279_v2, %v4278_v1  ;;  %v4281_v22 = vpop.f32.mrb[46].mxu1 }
0x1a20   :  { %v4282_v3 = vpop.f32.mrb[47].mxu1 }
0x1a21   :  { %v3998_v4 = vadd.f32 %v4280_v43, %v4150_v44 }
0x1a23   :  { %4004 = vst.msk [vmem:[#allocation2] sm:$0x3] %vm4003_vm7, %v3998_v4 }
0x1a24   :  { %4721 = shalt.err (!%p4718_p4)
}
0x1a25   :  { %s4722_s21 = scalar_lea.hbm %s5538_s22, 32 }
0x1a26   :  { %p4723_p5 = scmp.ne.s32.totalorder %s5538_s22, %s4722_s21  ;;  %p4726_p6 = scmp.lt.u32.totalorder %s4722_s21, %s5538_s22 }
0x1a28   :  { %p4728_p7 = pnand %p4726_p6, %p4723_p5 }
0x1a2a   :  { %4731 = shalt.err (!%p4728_p7)
}
0x1a2b   :  { %4014 = dma.vmem_to_hbm [thread:$0]  %s4012_s13, 32, %s5538_s22, [#allocation3]  }
0x1a2c   :  { %4732 = dma.done.wait [#allocation3], 32  }
0x1a2d   :  { %4733 = vsyncadd [#allocation3], 4294967264 }
0x1a2e   :  { %4018 = vsyncpa [#allocation3], 1 }

</bundles_post_ra>
